<compile_context>
chip_gen: v7x
topology: tpu7x:2x2x1
jax: 0.10.0
libtpu: 0.0.40
codegen_flags: <defaults>
</compile_context>

<pallas_src>
import functools

import jax
import jax.numpy as jnp
import numpy as np
from jax.experimental import pallas as pl
from jax.experimental.pallas import tpu as pltpu


def _tree_reduce(op, xs):
    """Log-depth pairwise reduction of a static list of tiles."""
    xs = list(xs)
    while len(xs) > 1:
        nxt = [op(xs[i], xs[i + 1]) for i in range(0, len(xs) - 1, 2)]
        if len(xs) % 2:
            nxt.append(xs[-1])
        xs = nxt
    return xs[0]


# -----------------------------------------------------------------------------
# Single fused kernel: merged bi-LSTM recurrence + attention + output head.
# Gate column order along the 8H axis: [i_f i_b | f_f f_b | g_f g_b | o_f o_b]
# so each gate is a contiguous 2H slice holding [forward | backward] lanes.
# -----------------------------------------------------------------------------
def _fused_kernel(x_ref, wih_ref, whh_ref, b_ref, v_ref, wo_ref, bo_ref,
                  logits_ref, smax_ref, gx_ref, lstm_ref, *, S, B, H):
    H2, H8 = 2 * H, 8 * H

    # ---- Stage 1: input projection for BOTH directions, one bf16 MXU matmul.
    # x row-block t = [x_t | x_{S-1-t}] and wih is block structured, so
    # gates_x row-block t = [fwd gates of x_t | bwd gates of x_{S-1-t}], with
    # b_ih + b_hh (both directions) folded in once.  Written to VMEM scratch
    # so it does not stay live in vregs across the unrolled recurrence.
    gx_ref[...] = (
        jnp.dot(x_ref[...], wih_ref[...], preferred_element_type=jnp.float32)
        + b_ref[...]
    )                                                          # (S*B, 8H) f32

    whh = whh_ref[...]                                         # (2H, 8H) bf16

    # Hoisted constants: tanh-gate ('g') lane mask and the 0.5 pre-scale that
    # turns the single tanh pass into sigmoid for the i/f/o lanes.
    lane = jax.lax.broadcasted_iota(jnp.int32, (B, H8), 1)
    g_mask = (lane >= 2 * H2) & (lane < 3 * H2)                # columns [4H, 6H)
    gate_scale = jnp.where(g_mask, 1.0, 0.5).astype(jnp.float32)

    def cell(g, c):
        # sigmoid(x) = 0.5*(tanh(x/2) + 1): ONE transcendental pass over (B, 8H)
        th = jnp.tanh(g * gate_scale)
        act = jnp.where(g_mask, th, 0.5 * th + 0.5)
        i_g = act[:, 0:H2]
        f_g = act[:, H2:2 * H2]
        g_g = act[:, 2 * H2:3 * H2]
        o_g = act[:, 3 * H2:4 * H2]
        c_new = f_g * c + i_g * g_g                            # (B, 2H) = [fwd|bwd]
        h_new = o_g * jnp.tanh(c_new)
        return h_new, c_new

    # ---- Stage 2: ONE merged recurrence (fwd walks t, bwd walks S-1-t), fully
    # unrolled (S small & static); per-step h spilled to VMEM scratch in time
    # order so downstream stages read a clean (S*B, 2H) lstm_out.
    h = jnp.zeros((B, H2), jnp.float32)
    c = jnp.zeros((B, H2), jnp.float32)
    for t in range(S):
        g = gx_ref[pl.ds(t * B, B), :] + jnp.dot(
            h.astype(jnp.bfloat16), whh, preferred_element_type=jnp.float32)
        h, c = cell(g, c)
        # fwd half is the output at time t, bwd half the output at time S-1-t
        lstm_ref[pl.ds(t * B, B), 0:H] = h[:, 0:H]
        lstm_ref[pl.ds((S - 1 - t) * B, B), H:H2] = h[:, H:H2]

    # ---- Stage 3: folded attention + context + output head + softmax.
    lstm_flat = lstm_ref[...]                                  # (S*B, 2H)
    # scores = lstm_out . v   (fc_attn1/fc_attn2 folded; biases cancel in the
    # softmax over the sequence axis)
    s_all = jnp.sum(lstm_flat * v_ref[...], axis=-1, keepdims=True)   # (S*B, 1)
    s_t = [s_all[t * B:(t + 1) * B, :] for t in range(S)]
    m = _tree_reduce(jnp.maximum, s_t)                         # (B, 1)
    e_all = jnp.exp(s_all - jnp.concatenate([m] * S, axis=0))  # ONE exp
    e_t = [e_all[t * B:(t + 1) * B, :] for t in range(S)]
    denom = _tree_reduce(jnp.add, e_t)                         # (B, 1)
    ctx = _tree_reduce(
        jnp.add,
        [e_t[t] * lstm_flat[t * B:(t + 1) * B, :] for t in range(S)])
    ctx = ctx / denom                                          # exact normalize, (B, 2H)

    logits = (jnp.dot(ctx.astype(jnp.bfloat16), wo_ref[...],
                      preferred_element_type=jnp.float32) + bo_ref[...])
    logits_ref[...] = logits                                   # (B, O)

    # output softmax (dim=1): EXACT division so rows sum to 1.
    mx = jnp.max(logits, axis=1, keepdims=True)
    e2 = jnp.exp(logits - mx)
    smax_ref[...] = e2 / jnp.sum(e2, axis=1, keepdims=True)


# -----------------------------------------------------------------------------
# Wrapper: one pallas_call, everything VMEM-resident (footprint << 1 MiB).
# -----------------------------------------------------------------------------
def lstm_attention_forward(x, params):
    S, B, I = x.shape
    H = params["whh_f"].shape[1]
    O = params["k_wo"].shape[1]
    Bp = ((B + 7) // 8) * 8                 # pad batch to the 8-sublane width

    if Bp != B:
        x = jnp.pad(x, ((0, 0), (0, Bp - B), (0, 0)))
    # Row-block t of the flattened input holds [x_t | x_{S-1-t}] on the lanes,
    # so the backward direction needs no in-kernel reversal.
    x_cat = jnp.concatenate([x, x[::-1]], axis=-1)             # (S, Bp, 2I)
    x_flat = x_cat.reshape(S * Bp, 2 * I).astype(jnp.bfloat16)

    def full(shape):
        return pl.BlockSpec(shape, lambda i, _n=len(shape): (0,) * _n)

    args = (x_flat, params["k_wih"], params["k_whh"], params["k_b"],
            params["k_v"], params["k_wo"], params["k_bo"])

    logits, probs = pl.pallas_call(
        functools.partial(_fused_kernel, S=S, B=Bp, H=H),
        out_shape=(
            jax.ShapeDtypeStruct((Bp, O), jnp.float32),
            jax.ShapeDtypeStruct((Bp, O), jnp.float32),
        ),
        grid_spec=pltpu.PrefetchScalarGridSpec(
            num_scalar_prefetch=0,
            grid=(1,),
            in_specs=[full(a.shape) for a in args],
            out_specs=[full((Bp, O)), full((Bp, O))],
            scratch_shapes=[
                pltpu.VMEM((S * Bp, 8 * H), jnp.float32),      # gates_x
                pltpu.VMEM((S * Bp, 2 * H), jnp.float32),      # lstm_out (time order)
            ],
        ),
        compiler_params=pltpu.CompilerParams(
            dimension_semantics=("arbitrary",)),
    )(*args)
    return logits[:B], probs[:B]


# -----------------------------------------------------------------------------
# Parameter construction: PyTorch-layout originals (for the reference) plus
# kernel-layout weights (gate-interleaved, block structured, bf16 MXU operands,
# attention head folded to a single direction vector).
# -----------------------------------------------------------------------------
def init_params(key, input_size, hidden, fc_size, output_size):
    H, I = hidden, input_size
    k = 1.0 / np.sqrt(hidden)

    def u(key, shape):
        return jax.random.uniform(key, shape, jnp.float32, -k, k)

    keys = jax.random.split(key, 14)

    # --- PyTorch-layout originals (gate order [i, f, g, o]) -------------------
    wih_f = u(keys[0], (4 * H, I))
    whh_f = u(keys[1], (4 * H, H))
    b_f = u(keys[2], (4 * H,)) + u(keys[3], (4 * H,))          # b_ih + b_hh
    wih_b = u(keys[4], (4 * H, I))
    whh_b = u(keys[5], (4 * H, H))
    b_b = u(keys[6], (4 * H,)) + u(keys[7], (4 * H,))

    w1 = u(keys[8], (fc_size, 2 * H))                          # fc_attn1
    b1 = u(keys[9], (fc_size,))
    w2 = u(keys[10], (1, fc_size))                             # fc_attn2
    b2 = u(keys[11], (1,))
    wo = u(keys[12], (output_size, 2 * H))                     # fc_out
    bo = u(keys[13], (output_size,))

    # --- Kernel-layout weights ------------------------------------------------
    # Column order along the 8H axis: [i_f i_b | f_f f_b | g_f g_b | o_f o_b].
    def interleave(f_part, b_part):
        cols = []
        for g in range(4):
            cols.append(f_part[:, g * H:(g + 1) * H])
            cols.append(b_part[:, g * H:(g + 1) * H])
        return jnp.concatenate(cols, axis=1)

    zI = jnp.zeros((I, 4 * H), jnp.float32)
    zH = jnp.zeros((H, 4 * H), jnp.float32)
    k_wih = jnp.concatenate([interleave(wih_f.T, zI),
                             interleave(zI, wih_b.T)],
                            axis=0).astype(jnp.bfloat16)       # (2I, 8H)
    k_whh = jnp.concatenate([interleave(whh_f.T, zH),
                             interleave(zH, whh_b.T)],
                            axis=0).astype(jnp.bfloat16)       # (2H, 8H)
    k_b = interleave(b_f.reshape(1, 4 * H), b_b.reshape(1, 4 * H))  # (1, 8H) f32

    # Attention head folded offline (no nonlinearity between fc_attn1 and
    # fc_attn2; the bias terms only shift scores by a constant which the
    # softmax over the sequence axis cancels).
    k_v = (w1.T @ w2[0]).reshape(1, 2 * H)                     # (1, 2H) f32

    k_wo = wo.T.astype(jnp.bfloat16)                           # (2H, O)
    k_bo = bo.reshape(1, output_size)                          # (1, O) f32

    return dict(
        # reference (PyTorch) layout
        wih_f=wih_f, whh_f=whh_f, b_f=b_f, wih_b=wih_b, whh_b=whh_b, b_b=b_b,
        w1=w1, b1=b1, w2=w2, b2=b2, wo=wo, bo=bo,
        # kernel layout
        k_wih=k_wih, k_whh=k_whh, k_b=k_b, k_v=k_v, k_wo=k_wo, k_bo=k_bo,
    )


# -----------------------------------------------------------------------------
# Pure-JAX f32 reference (matches the PyTorch module, unfused attention head).
# -----------------------------------------------------------------------------
def _reference_forward(x, params):
    S, B, I = x.shape
    H = params["whh_f"].shape[1]

    def run(xs, wih, whh, b):
        def step(carry, x_t):
            h, c = carry
            g = x_t @ wih.T + h @ whh.T + b
            i = jax.nn.sigmoid(g[:, :H])
            f = jax.nn.sigmoid(g[:, H:2 * H])
            gg = jnp.tanh(g[:, 2 * H:3 * H])
            o = jax.nn.sigmoid(g[:, 3 * H:])
            c = f * c + i * gg
            h = o * jnp.tanh(c)
            return (h, c), h
        init = (jnp.zeros((B, H), jnp.float32), jnp.zeros((B, H), jnp.float32))
        _, hs = jax.lax.scan(step, init, xs)
        return hs

    out_f = run(x, params["wih_f"], params["whh_f"], params["b_f"])
    out_b = run(x[::-1], params["wih_b"], params["whh_b"], params["b_b"])[::-1]
    lstm_out = jnp.concatenate([out_f, out_b], axis=-1)        # (S, B, 2H)

    flat = lstm_out.reshape(S * B, 2 * H)
    h1 = flat @ params["w1"].T + params["b1"]
    sc = (h1 @ params["w2"].T + params["b2"]).reshape(S, B)
    attn = jax.nn.softmax(sc, axis=0)
    ctx = jnp.sum(attn[:, :, None] * lstm_out, axis=0)
    logits = ctx @ params["wo"].T + params["bo"]
    probs = jax.nn.softmax(logits, axis=1)
    return logits, probs


if __name__ == "__main__":
    input_size = 16
    hidden_nodes = 32
    sequence_size = 8
    fc_size = 50        # hard-coded in the PyTorch module (Linear(2H, 50))
    output_size = 8
    batch = 4

    root = jax.random.PRNGKey(0)
    kx, kp = jax.random.split(root)
    x = jax.random.normal(kx, (sequence_size, batch, input_size), jnp.float32)
    params = init_params(kp, input_size, hidden_nodes, fc_size, output_size)

    fwd = jax.jit(lstm_attention_forward)
    logits, probs = fwd(x, params)
    jax.block_until_ready((logits, probs))

    assert logits.shape == (batch, output_size)
    assert probs.shape == (batch, output_size)

    ref_logits, ref_probs = _reference_forward(x, params)
    # f32 reference with exact division; tolerances sized for bf16 MXU operands.
    np.testing.assert_allclose(np.asarray(logits), np.asarray(ref_logits), atol=4e-2)
    np.testing.assert_allclose(np.asarray(probs), np.asarray(ref_probs), atol=3e-2)
    # Output softmax uses exact division -> rows sum to 1 to f32 accuracy.
    np.testing.assert_allclose(np.asarray(jnp.sum(probs, axis=1)),
                               np.ones((batch,), np.float32), atol=1e-4)

    print("KERNEL_OK")
</pallas_src>

<mosaic_0001>
module attributes {stable_mosaic.version = 11 : i64} {
  func.func @_fused_kernel(%arg0: i32, %arg1: memref<64x32xbf16, #tpu.memory_space<vmem>>, %arg2: memref<32x256xbf16, #tpu.memory_space<vmem>>, %arg3: memref<64x256xbf16, #tpu.memory_space<vmem>>, %arg4: memref<1x256xf32, #tpu.memory_space<vmem>>, %arg5: memref<1x64xf32, #tpu.memory_space<vmem>>, %arg6: memref<64x8xbf16, #tpu.memory_space<vmem>>, %arg7: memref<1x8xf32, #tpu.memory_space<vmem>>, %arg8: memref<8x8xf32, #tpu.memory_space<vmem>>, %arg9: memref<8x8xf32, #tpu.memory_space<vmem>>, %arg10: memref<64x256xf32, #tpu.memory_space<vmem>>, %arg11: memref<64x64xf32, #tpu.memory_space<vmem>>) attributes {dimension_semantics = [#tpu.dimension_semantics<arbitrary>], iteration_bounds = array<i64: 1>, scalar_prefetch = 0 : i64, scratch_operands = 2 : i64, tpu.core_type = #tpu.core_type<tc>, window_params = [{pipeline_mode = #tpu.pipeline_mode<synchronous>, transform_indices = @transform_0, window_bounds = array<i64: 64, 32>}, {pipeline_mode = #tpu.pipeline_mode<synchronous>, transform_indices = @transform_1, window_bounds = array<i64: 32, 256>}, {pipeline_mode = #tpu.pipeline_mode<synchronous>, transform_indices = @transform_2, window_bounds = array<i64: 64, 256>}, {pipeline_mode = #tpu.pipeline_mode<synchronous>, transform_indices = @transform_3, window_bounds = array<i64: 1, 256>}, {pipeline_mode = #tpu.pipeline_mode<synchronous>, transform_indices = @transform_4, window_bounds = array<i64: 1, 64>}, {pipeline_mode = #tpu.pipeline_mode<synchronous>, transform_indices = @transform_5, window_bounds = array<i64: 64, 8>}, {pipeline_mode = #tpu.pipeline_mode<synchronous>, transform_indices = @transform_6, window_bounds = array<i64: 1, 8>}, {pipeline_mode = #tpu.pipeline_mode<synchronous>, transform_indices = @transform_7, window_bounds = array<i64: 8, 8>}, {pipeline_mode = #tpu.pipeline_mode<synchronous>, transform_indices = @transform_8, window_bounds = array<i64: 8, 8>}]} {
    %c0 = arith.constant 0 : index
    %c0_0 = arith.constant 0 : index
    %0 = vector.load %arg1[%c0, %c0_0] : memref<64x32xbf16, #tpu.memory_space<vmem>>, vector<64x32xbf16>
    %c0_1 = arith.constant 0 : index
    %c0_2 = arith.constant 0 : index
    %1 = vector.load %arg2[%c0_1, %c0_2] : memref<32x256xbf16, #tpu.memory_space<vmem>>, vector<32x256xbf16>
    %cst = arith.constant dense<0.000000e+00> : vector<64x256xf32>
    %2 = tpu.matmul %0, %1, %cst {dimension_numbers = #tpu.dot_dimension_numbers<[1], [0], [0], [1], [0, 0, 1, 1], [], []>} : vector<64x32xbf16>, vector<32x256xbf16>, vector<64x256xf32> -> vector<64x256xf32>
    %c0_3 = arith.constant 0 : index
    %c0_4 = arith.constant 0 : index
    %3 = vector.load %arg4[%c0_3, %c0_4] : memref<1x256xf32, #tpu.memory_space<vmem>>, vector<1x256xf32>
    %4 = vector.broadcast %3 : vector<1x256xf32> to vector<64x256xf32>
    %5 = arith.addf %2, %4 : vector<64x256xf32>
    %c0_5 = arith.constant 0 : index
    %c0_6 = arith.constant 0 : index
    %6 = vector.load %arg10[%c0_5, %c0_6] : memref<64x256xf32, #tpu.memory_space<vmem>>, vector<64x256xf32>
    tpu.vector_store %arg10[%c0_5, %c0_6], %5 {strides = array<i32>} : memref<64x256xf32, #tpu.memory_space<vmem>>, vector<64x256xf32>,
    %c0_7 = arith.constant 0 : index
    %c0_8 = arith.constant 0 : index
    %7 = vector.load %arg3[%c0_7, %c0_8] : memref<64x256xbf16, #tpu.memory_space<vmem>>, vector<64x256xbf16>
    %8 = tpu.iota {dimensions = array<i32: 1>} : vector<8x256xi32>
    %c128_i32 = arith.constant 128 : i32
    %9 = vector.broadcast %c128_i32 : i32 to vector<8x256xi32>
    %10 = arith.cmpi sge, %8, %9 : vector<8x256xi32>
    %c192_i32 = arith.constant 192 : i32
    %11 = vector.broadcast %c192_i32 : i32 to vector<8x256xi32>
    %12 = arith.cmpi slt, %8, %11 : vector<8x256xi32>
    %13 = arith.andi %10, %12 : vector<8x256xi1>
    %cst_9 = arith.constant 1.000000e+00 : f32
    %cst_10 = arith.constant 5.000000e-01 : f32
    %14 = vector.broadcast %cst_9 : f32 to vector<8x256xf32>
    %15 = vector.broadcast %cst_10 : f32 to vector<8x256xf32>
    %16 = arith.select %13, %14, %15 : vector<8x256xi1>, vector<8x256xf32>
    %cst_11 = arith.constant 0.000000e+00 : f32
    %17 = vector.broadcast %cst_11 : f32 to vector<8x64xf32>
    %cst_12 = arith.constant 0.000000e+00 : f32
    %18 = vector.broadcast %cst_12 : f32 to vector<8x64xf32>
    %c0_13 = arith.constant 0 : index
    %c0_14 = arith.constant 0 : index
    %19 = vector.load %arg10[%c0_13, %c0_14] : memref<64x256xf32, #tpu.memory_space<vmem>>, vector<8x256xf32>
    %20 = arith.truncf %17 : vector<8x64xf32> to vector<8x64xbf16>
    %cst_15 = arith.constant dense<0.000000e+00> : vector<8x256xf32>
    %21 = tpu.matmul %20, %7, %cst_15 {dimension_numbers = #tpu.dot_dimension_numbers<[1], [0], [0], [1], [0, 0, 1, 1], [], []>} : vector<8x64xbf16>, vector<64x256xbf16>, vector<8x256xf32> -> vector<8x256xf32>
    %22 = arith.addf %19, %21 : vector<8x256xf32>
    %23 = arith.mulf %22, %16 : vector<8x256xf32>
    %24 = math.tanh %23 : vector<8x256xf32>
    %cst_16 = arith.constant 5.000000e-01 : f32
    %25 = vector.broadcast %cst_16 : f32 to vector<8x256xf32>
    %26 = arith.mulf %25, %24 : vector<8x256xf32>
    %cst_17 = arith.constant 5.000000e-01 : f32
    %27 = vector.broadcast %cst_17 : f32 to vector<8x256xf32>
    %28 = arith.addf %26, %27 : vector<8x256xf32>
    %29 = arith.select %13, %24, %28 : vector<8x256xi1>, vector<8x256xf32>
    %30 = vector.extract_strided_slice %29 {offsets = [0, 0], sizes = [8, 64], strides = [1, 1]} : vector<8x256xf32> to vector<8x64xf32>
    %31 = vector.extract_strided_slice %29 {offsets = [0, 64], sizes = [8, 64], strides = [1, 1]} : vector<8x256xf32> to vector<8x64xf32>
    %32 = vector.extract_strided_slice %29 {offsets = [0, 128], sizes = [8, 64], strides = [1, 1]} : vector<8x256xf32> to vector<8x64xf32>
    %33 = vector.extract_strided_slice %29 {offsets = [0, 192], sizes = [8, 64], strides = [1, 1]} : vector<8x256xf32> to vector<8x64xf32>
    %34 = arith.mulf %31, %18 : vector<8x64xf32>
    %35 = arith.mulf %30, %32 : vector<8x64xf32>
    %36 = arith.addf %34, %35 : vector<8x64xf32>
    %37 = math.tanh %36 : vector<8x64xf32>
    %38 = arith.mulf %33, %37 : vector<8x64xf32>
    %39 = vector.extract_strided_slice %38 {offsets = [0, 0], sizes = [8, 32], strides = [1, 1]} : vector<8x64xf32> to vector<8x32xf32>
    %c0_18 = arith.constant 0 : index
    %c0_19 = arith.constant 0 : index
    %40 = vector.load %arg11[%c0_18, %c0_19] : memref<64x64xf32, #tpu.memory_space<vmem>>, vector<8x32xf32>
    tpu.vector_store %arg11[%c0_18, %c0_19], %39 {strides = array<i32>} : memref<64x64xf32, #tpu.memory_space<vmem>>, vector<8x32xf32>,
    %41 = vector.extract_strided_slice %38 {offsets = [0, 32], sizes = [8, 32], strides = [1, 1]} : vector<8x64xf32> to vector<8x32xf32>
    %c56 = arith.constant 56 : index
    %c32 = arith.constant 32 : index
    %42 = vector.load %arg11[%c56, %c32] : memref<64x64xf32, #tpu.memory_space<vmem>>, vector<8x32xf32>
    tpu.vector_store %arg11[%c56, %c32], %41 {strides = array<i32>} : memref<64x64xf32, #tpu.memory_space<vmem>>, vector<8x32xf32>,
    %c8 = arith.constant 8 : index
    %c0_20 = arith.constant 0 : index
    %43 = vector.load %arg10[%c8, %c0_20] : memref<64x256xf32, #tpu.memory_space<vmem>>, vector<8x256xf32>
    %44 = arith.truncf %38 : vector<8x64xf32> to vector<8x64xbf16>
    %cst_21 = arith.constant dense<0.000000e+00> : vector<8x256xf32>
    %45 = tpu.matmul %44, %7, %cst_21 {dimension_numbers = #tpu.dot_dimension_numbers<[1], [0], [0], [1], [0, 0, 1, 1], [], []>} : vector<8x64xbf16>, vector<64x256xbf16>, vector<8x256xf32> -> vector<8x256xf32>
    %46 = arith.addf %43, %45 : vector<8x256xf32>
    %47 = arith.mulf %46, %16 : vector<8x256xf32>
    %48 = math.tanh %47 : vector<8x256xf32>
    %cst_22 = arith.constant 5.000000e-01 : f32
    %49 = vector.broadcast %cst_22 : f32 to vector<8x256xf32>
    %50 = arith.mulf %49, %48 : vector<8x256xf32>
    %cst_23 = arith.constant 5.000000e-01 : f32
    %51 = vector.broadcast %cst_23 : f32 to vector<8x256xf32>
    %52 = arith.addf %50, %51 : vector<8x256xf32>
    %53 = arith.select %13, %48, %52 : vector<8x256xi1>, vector<8x256xf32>
    %54 = vector.extract_strided_slice %53 {offsets = [0, 0], sizes = [8, 64], strides = [1, 1]} : vector<8x256xf32> to vector<8x64xf32>
    %55 = vector.extract_strided_slice %53 {offsets = [0, 64], sizes = [8, 64], strides = [1, 1]} : vector<8x256xf32> to vector<8x64xf32>
    %56 = vector.extract_strided_slice %53 {offsets = [0, 128], sizes = [8, 64], strides = [1, 1]} : vector<8x256xf32> to vector<8x64xf32>
    %57 = vector.extract_strided_slice %53 {offsets = [0, 192], sizes = [8, 64], strides = [1, 1]} : vector<8x256xf32> to vector<8x64xf32>
    %58 = arith.mulf %55, %36 : vector<8x64xf32>
    %59 = arith.mulf %54, %56 : vector<8x64xf32>
    %60 = arith.addf %58, %59 : vector<8x64xf32>
    %61 = math.tanh %60 : vector<8x64xf32>
    %62 = arith.mulf %57, %61 : vector<8x64xf32>
    %63 = vector.extract_strided_slice %62 {offsets = [0, 0], sizes = [8, 32], strides = [1, 1]} : vector<8x64xf32> to vector<8x32xf32>
    %c8_24 = arith.constant 8 : index
    %c0_25 = arith.constant 0 : index
    %64 = vector.load %arg11[%c8_24, %c0_25] : memref<64x64xf32, #tpu.memory_space<vmem>>, vector<8x32xf32>
    tpu.vector_store %arg11[%c8_24, %c0_25], %63 {strides = array<i32>} : memref<64x64xf32, #tpu.memory_space<vmem>>, vector<8x32xf32>,
    %65 = vector.extract_strided_slice %62 {offsets = [0, 32], sizes = [8, 32], strides = [1, 1]} : vector<8x64xf32> to vector<8x32xf32>
    %c48 = arith.constant 48 : index
    %c32_26 = arith.constant 32 : index
    %66 = vector.load %arg11[%c48, %c32_26] : memref<64x64xf32, #tpu.memory_space<vmem>>, vector<8x32xf32>
    tpu.vector_store %arg11[%c48, %c32_26], %65 {strides = array<i32>} : memref<64x64xf32, #tpu.memory_space<vmem>>, vector<8x32xf32>,
    %c16 = arith.constant 16 : index
    %c0_27 = arith.constant 0 : index
    %67 = vector.load %arg10[%c16, %c0_27] : memref<64x256xf32, #tpu.memory_space<vmem>>, vector<8x256xf32>
    %68 = arith.truncf %62 : vector<8x64xf32> to vector<8x64xbf16>
    %cst_28 = arith.constant dense<0.000000e+00> : vector<8x256xf32>
    %69 = tpu.matmul %68, %7, %cst_28 {dimension_numbers = #tpu.dot_dimension_numbers<[1], [0], [0], [1], [0, 0, 1, 1], [], []>} : vector<8x64xbf16>, vector<64x256xbf16>, vector<8x256xf32> -> vector<8x256xf32>
    %70 = arith.addf %67, %69 : vector<8x256xf32>
    %71 = arith.mulf %70, %16 : vector<8x256xf32>
    %72 = math.tanh %71 : vector<8x256xf32>
    %cst_29 = arith.constant 5.000000e-01 : f32
    %73 = vector.broadcast %cst_29 : f32 to vector<8x256xf32>
    %74 = arith.mulf %73, %72 : vector<8x256xf32>
    %cst_30 = arith.constant 5.000000e-01 : f32
    %75 = vector.broadcast %cst_30 : f32 to vector<8x256xf32>
    %76 = arith.addf %74, %75 : vector<8x256xf32>
    %77 = arith.select %13, %72, %76 : vector<8x256xi1>, vector<8x256xf32>
    %78 = vector.extract_strided_slice %77 {offsets = [0, 0], sizes = [8, 64], strides = [1, 1]} : vector<8x256xf32> to vector<8x64xf32>
    %79 = vector.extract_strided_slice %77 {offsets = [0, 64], sizes = [8, 64], strides = [1, 1]} : vector<8x256xf32> to vector<8x64xf32>
    %80 = vector.extract_strided_slice %77 {offsets = [0, 128], sizes = [8, 64], strides = [1, 1]} : vector<8x256xf32> to vector<8x64xf32>
    %81 = vector.extract_strided_slice %77 {offsets = [0, 192], sizes = [8, 64], strides = [1, 1]} : vector<8x256xf32> to vector<8x64xf32>
    %82 = arith.mulf %79, %60 : vector<8x64xf32>
    %83 = arith.mulf %78, %80 : vector<8x64xf32>
    %84 = arith.addf %82, %83 : vector<8x64xf32>
    %85 = math.tanh %84 : vector<8x64xf32>
    %86 = arith.mulf %81, %85 : vector<8x64xf32>
    %87 = vector.extract_strided_slice %86 {offsets = [0, 0], sizes = [8, 32], strides = [1, 1]} : vector<8x64xf32> to vector<8x32xf32>
    %c16_31 = arith.constant 16 : index
    %c0_32 = arith.constant 0 : index
    %88 = vector.load %arg11[%c16_31, %c0_32] : memref<64x64xf32, #tpu.memory_space<vmem>>, vector<8x32xf32>
    tpu.vector_store %arg11[%c16_31, %c0_32], %87 {strides = array<i32>} : memref<64x64xf32, #tpu.memory_space<vmem>>, vector<8x32xf32>,
    %89 = vector.extract_strided_slice %86 {offsets = [0, 32], sizes = [8, 32], strides = [1, 1]} : vector<8x64xf32> to vector<8x32xf32>
    %c40 = arith.constant 40 : index
    %c32_33 = arith.constant 32 : index
    %90 = vector.load %arg11[%c40, %c32_33] : memref<64x64xf32, #tpu.memory_space<vmem>>, vector<8x32xf32>
    tpu.vector_store %arg11[%c40, %c32_33], %89 {strides = array<i32>} : memref<64x64xf32, #tpu.memory_space<vmem>>, vector<8x32xf32>,
    %c24 = arith.constant 24 : index
    %c0_34 = arith.constant 0 : index
    %91 = vector.load %arg10[%c24, %c0_34] : memref<64x256xf32, #tpu.memory_space<vmem>>, vector<8x256xf32>
    %92 = arith.truncf %86 : vector<8x64xf32> to vector<8x64xbf16>
    %cst_35 = arith.constant dense<0.000000e+00> : vector<8x256xf32>
    %93 = tpu.matmul %92, %7, %cst_35 {dimension_numbers = #tpu.dot_dimension_numbers<[1], [0], [0], [1], [0, 0, 1, 1], [], []>} : vector<8x64xbf16>, vector<64x256xbf16>, vector<8x256xf32> -> vector<8x256xf32>
    %94 = arith.addf %91, %93 : vector<8x256xf32>
    %95 = arith.mulf %94, %16 : vector<8x256xf32>
    %96 = math.tanh %95 : vector<8x256xf32>
    %cst_36 = arith.constant 5.000000e-01 : f32
    %97 = vector.broadcast %cst_36 : f32 to vector<8x256xf32>
    %98 = arith.mulf %97, %96 : vector<8x256xf32>
    %cst_37 = arith.constant 5.000000e-01 : f32
    %99 = vector.broadcast %cst_37 : f32 to vector<8x256xf32>
    %100 = arith.addf %98, %99 : vector<8x256xf32>
    %101 = arith.select %13, %96, %100 : vector<8x256xi1>, vector<8x256xf32>
    %102 = vector.extract_strided_slice %101 {offsets = [0, 0], sizes = [8, 64], strides = [1, 1]} : vector<8x256xf32> to vector<8x64xf32>
    %103 = vector.extract_strided_slice %101 {offsets = [0, 64], sizes = [8, 64], strides = [1, 1]} : vector<8x256xf32> to vector<8x64xf32>
    %104 = vector.extract_strided_slice %101 {offsets = [0, 128], sizes = [8, 64], strides = [1, 1]} : vector<8x256xf32> to vector<8x64xf32>
    %105 = vector.extract_strided_slice %101 {offsets = [0, 192], sizes = [8, 64], strides = [1, 1]} : vector<8x256xf32> to vector<8x64xf32>
    %106 = arith.mulf %103, %84 : vector<8x64xf32>
    %107 = arith.mulf %102, %104 : vector<8x64xf32>
    %108 = arith.addf %106, %107 : vector<8x64xf32>
    %109 = math.tanh %108 : vector<8x64xf32>
    %110 = arith.mulf %105, %109 : vector<8x64xf32>
    %111 = vector.extract_strided_slice %110 {offsets = [0, 0], sizes = [8, 32], strides = [1, 1]} : vector<8x64xf32> to vector<8x32xf32>
    %c24_38 = arith.constant 24 : index
    %c0_39 = arith.constant 0 : index
    %112 = vector.load %arg11[%c24_38, %c0_39] : memref<64x64xf32, #tpu.memory_space<vmem>>, vector<8x32xf32>
    tpu.vector_store %arg11[%c24_38, %c0_39], %111 {strides = array<i32>} : memref<64x64xf32, #tpu.memory_space<vmem>>, vector<8x32xf32>,
    %113 = vector.extract_strided_slice %110 {offsets = [0, 32], sizes = [8, 32], strides = [1, 1]} : vector<8x64xf32> to vector<8x32xf32>
    %c32_40 = arith.constant 32 : index
    %c32_41 = arith.constant 32 : index
    %114 = vector.load %arg11[%c32_40, %c32_41] : memref<64x64xf32, #tpu.memory_space<vmem>>, vector<8x32xf32>
    tpu.vector_store %arg11[%c32_40, %c32_41], %113 {strides = array<i32>} : memref<64x64xf32, #tpu.memory_space<vmem>>, vector<8x32xf32>,
    %c32_42 = arith.constant 32 : index
    %c0_43 = arith.constant 0 : index
    %115 = vector.load %arg10[%c32_42, %c0_43] : memref<64x256xf32, #tpu.memory_space<vmem>>, vector<8x256xf32>
    %116 = arith.truncf %110 : vector<8x64xf32> to vector<8x64xbf16>
    %cst_44 = arith.constant dense<0.000000e+00> : vector<8x256xf32>
    %117 = tpu.matmul %116, %7, %cst_44 {dimension_numbers = #tpu.dot_dimension_numbers<[1], [0], [0], [1], [0, 0, 1, 1], [], []>} : vector<8x64xbf16>, vector<64x256xbf16>, vector<8x256xf32> -> vector<8x256xf32>
    %118 = arith.addf %115, %117 : vector<8x256xf32>
    %119 = arith.mulf %118, %16 : vector<8x256xf32>
    %120 = math.tanh %119 : vector<8x256xf32>
    %cst_45 = arith.constant 5.000000e-01 : f32
    %121 = vector.broadcast %cst_45 : f32 to vector<8x256xf32>
    %122 = arith.mulf %121, %120 : vector<8x256xf32>
    %cst_46 = arith.constant 5.000000e-01 : f32
    %123 = vector.broadcast %cst_46 : f32 to vector<8x256xf32>
    %124 = arith.addf %122, %123 : vector<8x256xf32>
    %125 = arith.select %13, %120, %124 : vector<8x256xi1>, vector<8x256xf32>
    %126 = vector.extract_strided_slice %125 {offsets = [0, 0], sizes = [8, 64], strides = [1, 1]} : vector<8x256xf32> to vector<8x64xf32>
    %127 = vector.extract_strided_slice %125 {offsets = [0, 64], sizes = [8, 64], strides = [1, 1]} : vector<8x256xf32> to vector<8x64xf32>
    %128 = vector.extract_strided_slice %125 {offsets = [0, 128], sizes = [8, 64], strides = [1, 1]} : vector<8x256xf32> to vector<8x64xf32>
    %129 = vector.extract_strided_slice %125 {offsets = [0, 192], sizes = [8, 64], strides = [1, 1]} : vector<8x256xf32> to vector<8x64xf32>
    %130 = arith.mulf %127, %108 : vector<8x64xf32>
    %131 = arith.mulf %126, %128 : vector<8x64xf32>
    %132 = arith.addf %130, %131 : vector<8x64xf32>
    %133 = math.tanh %132 : vector<8x64xf32>
    %134 = arith.mulf %129, %133 : vector<8x64xf32>
    %135 = vector.extract_strided_slice %134 {offsets = [0, 0], sizes = [8, 32], strides = [1, 1]} : vector<8x64xf32> to vector<8x32xf32>
    %c32_47 = arith.constant 32 : index
    %c0_48 = arith.constant 0 : index
    %136 = vector.load %arg11[%c32_47, %c0_48] : memref<64x64xf32, #tpu.memory_space<vmem>>, vector<8x32xf32>
    tpu.vector_store %arg11[%c32_47, %c0_48], %135 {strides = array<i32>} : memref<64x64xf32, #tpu.memory_space<vmem>>, vector<8x32xf32>,
    %137 = vector.extract_strided_slice %134 {offsets = [0, 32], sizes = [8, 32], strides = [1, 1]} : vector<8x64xf32> to vector<8x32xf32>
    %c24_49 = arith.constant 24 : index
    %c32_50 = arith.constant 32 : index
    %138 = vector.load %arg11[%c24_49, %c32_50] : memref<64x64xf32, #tpu.memory_space<vmem>>, vector<8x32xf32>
    tpu.vector_store %arg11[%c24_49, %c32_50], %137 {strides = array<i32>} : memref<64x64xf32, #tpu.memory_space<vmem>>, vector<8x32xf32>,
    %c40_51 = arith.constant 40 : index
    %c0_52 = arith.constant 0 : index
    %139 = vector.load %arg10[%c40_51, %c0_52] : memref<64x256xf32, #tpu.memory_space<vmem>>, vector<8x256xf32>
    %140 = arith.truncf %134 : vector<8x64xf32> to vector<8x64xbf16>
    %cst_53 = arith.constant dense<0.000000e+00> : vector<8x256xf32>
    %141 = tpu.matmul %140, %7, %cst_53 {dimension_numbers = #tpu.dot_dimension_numbers<[1], [0], [0], [1], [0, 0, 1, 1], [], []>} : vector<8x64xbf16>, vector<64x256xbf16>, vector<8x256xf32> -> vector<8x256xf32>
    %142 = arith.addf %139, %141 : vector<8x256xf32>
    %143 = arith.mulf %142, %16 : vector<8x256xf32>
    %144 = math.tanh %143 : vector<8x256xf32>
    %cst_54 = arith.constant 5.000000e-01 : f32
    %145 = vector.broadcast %cst_54 : f32 to vector<8x256xf32>
    %146 = arith.mulf %145, %144 : vector<8x256xf32>
    %cst_55 = arith.constant 5.000000e-01 : f32
    %147 = vector.broadcast %cst_55 : f32 to vector<8x256xf32>
    %148 = arith.addf %146, %147 : vector<8x256xf32>
    %149 = arith.select %13, %144, %148 : vector<8x256xi1>, vector<8x256xf32>
    %150 = vector.extract_strided_slice %149 {offsets = [0, 0], sizes = [8, 64], strides = [1, 1]} : vector<8x256xf32> to vector<8x64xf32>
    %151 = vector.extract_strided_slice %149 {offsets = [0, 64], sizes = [8, 64], strides = [1, 1]} : vector<8x256xf32> to vector<8x64xf32>
    %152 = vector.extract_strided_slice %149 {offsets = [0, 128], sizes = [8, 64], strides = [1, 1]} : vector<8x256xf32> to vector<8x64xf32>
    %153 = vector.extract_strided_slice %149 {offsets = [0, 192], sizes = [8, 64], strides = [1, 1]} : vector<8x256xf32> to vector<8x64xf32>
    %154 = arith.mulf %151, %132 : vector<8x64xf32>
    %155 = arith.mulf %150, %152 : vector<8x64xf32>
    %156 = arith.addf %154, %155 : vector<8x64xf32>
    %157 = math.tanh %156 : vector<8x64xf32>
    %158 = arith.mulf %153, %157 : vector<8x64xf32>
    %159 = vector.extract_strided_slice %158 {offsets = [0, 0], sizes = [8, 32], strides = [1, 1]} : vector<8x64xf32> to vector<8x32xf32>
    %c40_56 = arith.constant 40 : index
    %c0_57 = arith.constant 0 : index
    %160 = vector.load %arg11[%c40_56, %c0_57] : memref<64x64xf32, #tpu.memory_space<vmem>>, vector<8x32xf32>
    tpu.vector_store %arg11[%c40_56, %c0_57], %159 {strides = array<i32>} : memref<64x64xf32, #tpu.memory_space<vmem>>, vector<8x32xf32>,
    %161 = vector.extract_strided_slice %158 {offsets = [0, 32], sizes = [8, 32], strides = [1, 1]} : vector<8x64xf32> to vector<8x32xf32>
    %c16_58 = arith.constant 16 : index
    %c32_59 = arith.constant 32 : index
    %162 = vector.load %arg11[%c16_58, %c32_59] : memref<64x64xf32, #tpu.memory_space<vmem>>, vector<8x32xf32>
    tpu.vector_store %arg11[%c16_58, %c32_59], %161 {strides = array<i32>} : memref<64x64xf32, #tpu.memory_space<vmem>>, vector<8x32xf32>,
    %c48_60 = arith.constant 48 : index
    %c0_61 = arith.constant 0 : index
    %163 = vector.load %arg10[%c48_60, %c0_61] : memref<64x256xf32, #tpu.memory_space<vmem>>, vector<8x256xf32>
    %164 = arith.truncf %158 : vector<8x64xf32> to vector<8x64xbf16>
    %cst_62 = arith.constant dense<0.000000e+00> : vector<8x256xf32>
    %165 = tpu.matmul %164, %7, %cst_62 {dimension_numbers = #tpu.dot_dimension_numbers<[1], [0], [0], [1], [0, 0, 1, 1], [], []>} : vector<8x64xbf16>, vector<64x256xbf16>, vector<8x256xf32> -> vector<8x256xf32>
    %166 = arith.addf %163, %165 : vector<8x256xf32>
    %167 = arith.mulf %166, %16 : vector<8x256xf32>
    %168 = math.tanh %167 : vector<8x256xf32>
    %cst_63 = arith.constant 5.000000e-01 : f32
    %169 = vector.broadcast %cst_63 : f32 to vector<8x256xf32>
    %170 = arith.mulf %169, %168 : vector<8x256xf32>
    %cst_64 = arith.constant 5.000000e-01 : f32
    %171 = vector.broadcast %cst_64 : f32 to vector<8x256xf32>
    %172 = arith.addf %170, %171 : vector<8x256xf32>
    %173 = arith.select %13, %168, %172 : vector<8x256xi1>, vector<8x256xf32>
    %174 = vector.extract_strided_slice %173 {offsets = [0, 0], sizes = [8, 64], strides = [1, 1]} : vector<8x256xf32> to vector<8x64xf32>
    %175 = vector.extract_strided_slice %173 {offsets = [0, 64], sizes = [8, 64], strides = [1, 1]} : vector<8x256xf32> to vector<8x64xf32>
    %176 = vector.extract_strided_slice %173 {offsets = [0, 128], sizes = [8, 64], strides = [1, 1]} : vector<8x256xf32> to vector<8x64xf32>
    %177 = vector.extract_strided_slice %173 {offsets = [0, 192], sizes = [8, 64], strides = [1, 1]} : vector<8x256xf32> to vector<8x64xf32>
    %178 = arith.mulf %175, %156 : vector<8x64xf32>
    %179 = arith.mulf %174, %176 : vector<8x64xf32>
    %180 = arith.addf %178, %179 : vector<8x64xf32>
    %181 = math.tanh %180 : vector<8x64xf32>
    %182 = arith.mulf %177, %181 : vector<8x64xf32>
    %183 = vector.extract_strided_slice %182 {offsets = [0, 0], sizes = [8, 32], strides = [1, 1]} : vector<8x64xf32> to vector<8x32xf32>
    %c48_65 = arith.constant 48 : index
    %c0_66 = arith.constant 0 : index
    %184 = vector.load %arg11[%c48_65, %c0_66] : memref<64x64xf32, #tpu.memory_space<vmem>>, vector<8x32xf32>
    tpu.vector_store %arg11[%c48_65, %c0_66], %183 {strides = array<i32>} : memref<64x64xf32, #tpu.memory_space<vmem>>, vector<8x32xf32>,
    %185 = vector.extract_strided_slice %182 {offsets = [0, 32], sizes = [8, 32], strides = [1, 1]} : vector<8x64xf32> to vector<8x32xf32>
    %c8_67 = arith.constant 8 : index
    %c32_68 = arith.constant 32 : index
    %186 = vector.load %arg11[%c8_67, %c32_68] : memref<64x64xf32, #tpu.memory_space<vmem>>, vector<8x32xf32>
    tpu.vector_store %arg11[%c8_67, %c32_68], %185 {strides = array<i32>} : memref<64x64xf32, #tpu.memory_space<vmem>>, vector<8x32xf32>,
    %c56_69 = arith.constant 56 : index
    %c0_70 = arith.constant 0 : index
    %187 = vector.load %arg10[%c56_69, %c0_70] : memref<64x256xf32, #tpu.memory_space<vmem>>, vector<8x256xf32>
    %188 = arith.truncf %182 : vector<8x64xf32> to vector<8x64xbf16>
    %cst_71 = arith.constant dense<0.000000e+00> : vector<8x256xf32>
    %189 = tpu.matmul %188, %7, %cst_71 {dimension_numbers = #tpu.dot_dimension_numbers<[1], [0], [0], [1], [0, 0, 1, 1], [], []>} : vector<8x64xbf16>, vector<64x256xbf16>, vector<8x256xf32> -> vector<8x256xf32>
    %190 = arith.addf %187, %189 : vector<8x256xf32>
    %191 = arith.mulf %190, %16 : vector<8x256xf32>
    %192 = math.tanh %191 : vector<8x256xf32>
    %cst_72 = arith.constant 5.000000e-01 : f32
    %193 = vector.broadcast %cst_72 : f32 to vector<8x256xf32>
    %194 = arith.mulf %193, %192 : vector<8x256xf32>
    %cst_73 = arith.constant 5.000000e-01 : f32
    %195 = vector.broadcast %cst_73 : f32 to vector<8x256xf32>
    %196 = arith.addf %194, %195 : vector<8x256xf32>
    %197 = arith.select %13, %192, %196 : vector<8x256xi1>, vector<8x256xf32>
    %198 = vector.extract_strided_slice %197 {offsets = [0, 0], sizes = [8, 64], strides = [1, 1]} : vector<8x256xf32> to vector<8x64xf32>
    %199 = vector.extract_strided_slice %197 {offsets = [0, 64], sizes = [8, 64], strides = [1, 1]} : vector<8x256xf32> to vector<8x64xf32>
    %200 = vector.extract_strided_slice %197 {offsets = [0, 128], sizes = [8, 64], strides = [1, 1]} : vector<8x256xf32> to vector<8x64xf32>
    %201 = vector.extract_strided_slice %197 {offsets = [0, 192], sizes = [8, 64], strides = [1, 1]} : vector<8x256xf32> to vector<8x64xf32>
    %202 = arith.mulf %199, %180 : vector<8x64xf32>
    %203 = arith.mulf %198, %200 : vector<8x64xf32>
    %204 = arith.addf %202, %203 : vector<8x64xf32>
    %205 = math.tanh %204 : vector<8x64xf32>
    %206 = arith.mulf %201, %205 : vector<8x64xf32>
    %207 = vector.extract_strided_slice %206 {offsets = [0, 0], sizes = [8, 32], strides = [1, 1]} : vector<8x64xf32> to vector<8x32xf32>
    %c56_74 = arith.constant 56 : index
    %c0_75 = arith.constant 0 : index
    %208 = vector.load %arg11[%c56_74, %c0_75] : memref<64x64xf32, #tpu.memory_space<vmem>>, vector<8x32xf32>
    tpu.vector_store %arg11[%c56_74, %c0_75], %207 {strides = array<i32>} : memref<64x64xf32, #tpu.memory_space<vmem>>, vector<8x32xf32>,
    %209 = vector.extract_strided_slice %206 {offsets = [0, 32], sizes = [8, 32], strides = [1, 1]} : vector<8x64xf32> to vector<8x32xf32>
    %c0_76 = arith.constant 0 : index
    %c32_77 = arith.constant 32 : index
    %210 = vector.load %arg11[%c0_76, %c32_77] : memref<64x64xf32, #tpu.memory_space<vmem>>, vector<8x32xf32>
    tpu.vector_store %arg11[%c0_76, %c32_77], %209 {strides = array<i32>} : memref<64x64xf32, #tpu.memory_space<vmem>>, vector<8x32xf32>,
    %c0_78 = arith.constant 0 : index
    %c0_79 = arith.constant 0 : index
    %211 = vector.load %arg11[%c0_78, %c0_79] : memref<64x64xf32, #tpu.memory_space<vmem>>, vector<64x64xf32>
    %c0_80 = arith.constant 0 : index
    %c0_81 = arith.constant 0 : index
    %212 = vector.load %arg5[%c0_80, %c0_81] : memref<1x64xf32, #tpu.memory_space<vmem>>, vector<1x64xf32>
    %213 = vector.broadcast %212 : vector<1x64xf32> to vector<64x64xf32>
    %214 = arith.mulf %211, %213 : vector<64x64xf32>
    %cst_82 = arith.constant dense<0.000000e+00> : vector<64xf32>
    %215 = vector.multi_reduction <add>, %214, %cst_82 [1] : vector<64x64xf32> to vector<64xf32>
    %216 = vector.shape_cast %215 : vector<64xf32> to vector<64x1xf32>
    %217 = vector.extract_strided_slice %216 {offsets = [0, 0], sizes = [8, 1], strides = [1, 1]} : vector<64x1xf32> to vector<8x1xf32>
    %218 = vector.extract_strided_slice %216 {offsets = [8, 0], sizes = [8, 1], strides = [1, 1]} : vector<64x1xf32> to vector<8x1xf32>
    %219 = vector.extract_strided_slice %216 {offsets = [16, 0], sizes = [8, 1], strides = [1, 1]} : vector<64x1xf32> to vector<8x1xf32>
    %220 = vector.extract_strided_slice %216 {offsets = [24, 0], sizes = [8, 1], strides = [1, 1]} : vector<64x1xf32> to vector<8x1xf32>
    %221 = vector.extract_strided_slice %216 {offsets = [32, 0], sizes = [8, 1], strides = [1, 1]} : vector<64x1xf32> to vector<8x1xf32>
    %222 = vector.extract_strided_slice %216 {offsets = [40, 0], sizes = [8, 1], strides = [1, 1]} : vector<64x1xf32> to vector<8x1xf32>
    %223 = vector.extract_strided_slice %216 {offsets = [48, 0], sizes = [8, 1], strides = [1, 1]} : vector<64x1xf32> to vector<8x1xf32>
    %224 = vector.extract_strided_slice %216 {offsets = [56, 0], sizes = [8, 1], strides = [1, 1]} : vector<64x1xf32> to vector<8x1xf32>
    %225 = arith.maximumf %217, %218 : vector<8x1xf32>
    %226 = arith.maximumf %219, %220 : vector<8x1xf32>
    %227 = arith.maximumf %221, %222 : vector<8x1xf32>
    %228 = arith.maximumf %223, %224 : vector<8x1xf32>
    %229 = arith.maximumf %225, %226 : vector<8x1xf32>
    %230 = arith.maximumf %227, %228 : vector<8x1xf32>
    %231 = arith.maximumf %229, %230 : vector<8x1xf32>
    %232 = tpu.concatenate %231, %231, %231, %231, %231, %231, %231, %231 in 0 : vector<8x1xf32>, vector<8x1xf32>, vector<8x1xf32>, vector<8x1xf32>, vector<8x1xf32>, vector<8x1xf32>, vector<8x1xf32>, vector<8x1xf32> -> vector<64x1xf32>
    %233 = arith.subf %216, %232 : vector<64x1xf32>
    %234 = math.exp %233 : vector<64x1xf32>
    %235 = vector.extract_strided_slice %234 {offsets = [0, 0], sizes = [8, 1], strides = [1, 1]} : vector<64x1xf32> to vector<8x1xf32>
    %236 = vector.extract_strided_slice %234 {offsets = [8, 0], sizes = [8, 1], strides = [1, 1]} : vector<64x1xf32> to vector<8x1xf32>
    %237 = vector.extract_strided_slice %234 {offsets = [16, 0], sizes = [8, 1], strides = [1, 1]} : vector<64x1xf32> to vector<8x1xf32>
    %238 = vector.extract_strided_slice %234 {offsets = [24, 0], sizes = [8, 1], strides = [1, 1]} : vector<64x1xf32> to vector<8x1xf32>
    %239 = vector.extract_strided_slice %234 {offsets = [32, 0], sizes = [8, 1], strides = [1, 1]} : vector<64x1xf32> to vector<8x1xf32>
    %240 = vector.extract_strided_slice %234 {offsets = [40, 0], sizes = [8, 1], strides = [1, 1]} : vector<64x1xf32> to vector<8x1xf32>
    %241 = vector.extract_strided_slice %234 {offsets = [48, 0], sizes = [8, 1], strides = [1, 1]} : vector<64x1xf32> to vector<8x1xf32>
    %242 = vector.extract_strided_slice %234 {offsets = [56, 0], sizes = [8, 1], strides = [1, 1]} : vector<64x1xf32> to vector<8x1xf32>
    %243 = arith.addf %235, %236 : vector<8x1xf32>
    %244 = arith.addf %237, %238 : vector<8x1xf32>
    %245 = arith.addf %239, %240 : vector<8x1xf32>
    %246 = arith.addf %241, %242 : vector<8x1xf32>
    %247 = arith.addf %243, %244 : vector<8x1xf32>
    %248 = arith.addf %245, %246 : vector<8x1xf32>
    %249 = arith.addf %247, %248 : vector<8x1xf32>
    %250 = vector.extract_strided_slice %211 {offsets = [0, 0], sizes = [8, 64], strides = [1, 1]} : vector<64x64xf32> to vector<8x64xf32>
    %251 = vector.broadcast %235 : vector<8x1xf32> to vector<8x64xf32>
    %252 = arith.mulf %251, %250 : vector<8x64xf32>
    %253 = vector.extract_strided_slice %211 {offsets = [8, 0], sizes = [8, 64], strides = [1, 1]} : vector<64x64xf32> to vector<8x64xf32>
    %254 = vector.broadcast %236 : vector<8x1xf32> to vector<8x64xf32>
    %255 = arith.mulf %254, %253 : vector<8x64xf32>
    %256 = vector.extract_strided_slice %211 {offsets = [16, 0], sizes = [8, 64], strides = [1, 1]} : vector<64x64xf32> to vector<8x64xf32>
    %257 = vector.broadcast %237 : vector<8x1xf32> to vector<8x64xf32>
    %258 = arith.mulf %257, %256 : vector<8x64xf32>
    %259 = vector.extract_strided_slice %211 {offsets = [24, 0], sizes = [8, 64], strides = [1, 1]} : vector<64x64xf32> to vector<8x64xf32>
    %260 = vector.broadcast %238 : vector<8x1xf32> to vector<8x64xf32>
    %261 = arith.mulf %260, %259 : vector<8x64xf32>
    %262 = vector.extract_strided_slice %211 {offsets = [32, 0], sizes = [8, 64], strides = [1, 1]} : vector<64x64xf32> to vector<8x64xf32>
    %263 = vector.broadcast %239 : vector<8x1xf32> to vector<8x64xf32>
    %264 = arith.mulf %263, %262 : vector<8x64xf32>
    %265 = vector.extract_strided_slice %211 {offsets = [40, 0], sizes = [8, 64], strides = [1, 1]} : vector<64x64xf32> to vector<8x64xf32>
    %266 = vector.broadcast %240 : vector<8x1xf32> to vector<8x64xf32>
    %267 = arith.mulf %266, %265 : vector<8x64xf32>
    %268 = vector.extract_strided_slice %211 {offsets = [48, 0], sizes = [8, 64], strides = [1, 1]} : vector<64x64xf32> to vector<8x64xf32>
    %269 = vector.broadcast %241 : vector<8x1xf32> to vector<8x64xf32>
    %270 = arith.mulf %269, %268 : vector<8x64xf32>
    %271 = vector.extract_strided_slice %211 {offsets = [56, 0], sizes = [8, 64], strides = [1, 1]} : vector<64x64xf32> to vector<8x64xf32>
    %272 = vector.broadcast %242 : vector<8x1xf32> to vector<8x64xf32>
    %273 = arith.mulf %272, %271 : vector<8x64xf32>
    %274 = arith.addf %252, %255 : vector<8x64xf32>
    %275 = arith.addf %258, %261 : vector<8x64xf32>
    %276 = arith.addf %264, %267 : vector<8x64xf32>
    %277 = arith.addf %270, %273 : vector<8x64xf32>
    %278 = arith.addf %274, %275 : vector<8x64xf32>
    %279 = arith.addf %276, %277 : vector<8x64xf32>
    %280 = arith.addf %278, %279 : vector<8x64xf32>
    %281 = vector.broadcast %249 : vector<8x1xf32> to vector<8x64xf32>
    %282 = arith.divf %280, %281 : vector<8x64xf32>
    %283 = arith.truncf %282 : vector<8x64xf32> to vector<8x64xbf16>
    %c0_83 = arith.constant 0 : index
    %c0_84 = arith.constant 0 : index
    %284 = vector.load %arg6[%c0_83, %c0_84] : memref<64x8xbf16, #tpu.memory_space<vmem>>, vector<64x8xbf16>
    %cst_85 = arith.constant dense<0.000000e+00> : vector<8x8xf32>
    %285 = tpu.matmul %283, %284, %cst_85 {dimension_numbers = #tpu.dot_dimension_numbers<[1], [0], [0], [1], [0, 0, 1, 1], [], []>} : vector<8x64xbf16>, vector<64x8xbf16>, vector<8x8xf32> -> vector<8x8xf32>
    %c0_86 = arith.constant 0 : index
    %c0_87 = arith.constant 0 : index
    %286 = vector.load %arg7[%c0_86, %c0_87] : memref<1x8xf32, #tpu.memory_space<vmem>>, vector<1x8xf32>
    %287 = vector.broadcast %286 : vector<1x8xf32> to vector<8x8xf32>
    %288 = arith.addf %285, %287 : vector<8x8xf32>
    %c0_88 = arith.constant 0 : index
    %c0_89 = arith.constant 0 : index
    %289 = vector.load %arg8[%c0_88, %c0_89] : memref<8x8xf32, #tpu.memory_space<vmem>>, vector<8x8xf32>
    tpu.vector_store %arg8[%c0_88, %c0_89], %288 {strides = array<i32>} : memref<8x8xf32, #tpu.memory_space<vmem>>, vector<8x8xf32>,
    %cst_90 = arith.constant dense<0xFF800000> : vector<8xf32>
    %290 = vector.multi_reduction <maximumf>, %288, %cst_90 [1] : vector<8x8xf32> to vector<8xf32>
    %291 = vector.shape_cast %290 : vector<8xf32> to vector<8x1xf32>
    %292 = vector.broadcast %291 : vector<8x1xf32> to vector<8x8xf32>
    %293 = arith.subf %288, %292 : vector<8x8xf32>
    %294 = math.exp %293 : vector<8x8xf32>
    %cst_91 = arith.constant dense<0.000000e+00> : vector<8xf32>
    %295 = vector.multi_reduction <add>, %294, %cst_91 [1] : vector<8x8xf32> to vector<8xf32>
    %296 = vector.shape_cast %295 : vector<8xf32> to vector<8x1xf32>
    %297 = vector.broadcast %296 : vector<8x1xf32> to vector<8x8xf32>
    %298 = arith.divf %294, %297 : vector<8x8xf32>
    %c0_92 = arith.constant 0 : index
    %c0_93 = arith.constant 0 : index
    %299 = vector.load %arg9[%c0_92, %c0_93] : memref<8x8xf32, #tpu.memory_space<vmem>>, vector<8x8xf32>
    tpu.vector_store %arg9[%c0_92, %c0_93], %298 {strides = array<i32>} : memref<8x8xf32, #tpu.memory_space<vmem>>, vector<8x8xf32>,
    return
  }
  func.func @transform_0(%arg0: i32) -> (i32, i32) {
    %c0_i32 = arith.constant 0 : i32
    %c0_i32_0 = arith.constant 0 : i32
    %c0_i32_1 = arith.constant 0 : i32
    return %c0_i32, %c0_i32_0 : i32, i32
  }
  func.func @transform_1(%arg0: i32) -> (i32, i32) {
    %c0_i32 = arith.constant 0 : i32
    %c0_i32_0 = arith.constant 0 : i32
    %c0_i32_1 = arith.constant 0 : i32
    return %c0_i32, %c0_i32_0 : i32, i32
  }
  func.func @transform_2(%arg0: i32) -> (i32, i32) {
    %c0_i32 = arith.constant 0 : i32
    %c0_i32_0 = arith.constant 0 : i32
    %c0_i32_1 = arith.constant 0 : i32
    return %c0_i32, %c0_i32_0 : i32, i32
  }
  func.func @transform_3(%arg0: i32) -> (i32, i32) {
    %c0_i32 = arith.constant 0 : i32
    %c0_i32_0 = arith.constant 0 : i32
    %c0_i32_1 = arith.constant 0 : i32
    return %c0_i32, %c0_i32_0 : i32, i32
  }
  func.func @transform_4(%arg0: i32) -> (i32, i32) {
    %c0_i32 = arith.constant 0 : i32
    %c0_i32_0 = arith.constant 0 : i32
    %c0_i32_1 = arith.constant 0 : i32
    return %c0_i32, %c0_i32_0 : i32, i32
  }
  func.func @transform_5(%arg0: i32) -> (i32, i32) {
    %c0_i32 = arith.constant 0 : i32
    %c0_i32_0 = arith.constant 0 : i32
    %c0_i32_1 = arith.constant 0 : i32
    return %c0_i32, %c0_i32_0 : i32, i32
  }
  func.func @transform_6(%arg0: i32) -> (i32, i32) {
    %c0_i32 = arith.constant 0 : i32
    %c0_i32_0 = arith.constant 0 : i32
    %c0_i32_1 = arith.constant 0 : i32
    return %c0_i32, %c0_i32_0 : i32, i32
  }
  func.func @transform_7(%arg0: i32) -> (i32, i32) {
    %c0_i32 = arith.constant 0 : i32
    %c0_i32_0 = arith.constant 0 : i32
    %c0_i32_1 = arith.constant 0 : i32
    return %c0_i32, %c0_i32_0 : i32, i32
  }
  func.func @transform_8(%arg0: i32) -> (i32, i32) {
    %c0_i32 = arith.constant 0 : i32
    %c0_i32_0 = arith.constant 0 : i32
    %c0_i32_1 = arith.constant 0 : i32
    return %c0_i32, %c0_i32_0 : i32, i32
  }
}

</mosaic_0001>

<bundles_post_ra>
// kernel: lstm_attention_forward.1
= control target key start
LH: loop header
LB: loop body
LE: loop exit
PB: predicated region body
PF: predicated region fallthrough
CT: control target
= control target key end

     0   :  { %v1274_v1 = vmov 0   ;;  %vm93_vm0 = vcmask 261120   ;;  %v43_v14 = vlaneseq  ;;  %v1275_v31 = vmov 0.5   ;;  %s1694_s2 = inlined_call_operand.vmem [shape: bf16[64,256], index: 2, kind: input, shape index: {}]   ;;  %s1695_s1 = inlined_call_operand.vmem [shape: bf16[32,256], index: 1, kind: input, shape index: {}]   ;;  %s1696_s0 = inlined_call_operand.vmem [shape: bf16[64,32], index: 0, kind: input, shape index: {}]   ;;  %s1697_s3 = inlined_call_operand.vmem [shape: f32[1,256], index: 3, kind: input, shape index: {}]   ;;  %s1698_s4 = inlined_call_operand.vmem [shape: f32[1,64], index: 4, kind: input, shape index: {}]   ;;  %s1699_s5 = inlined_call_operand.vmem [shape: bf16[64,8], index: 5, kind: input, shape index: {}]   ;;  %s1700_s6 = inlined_call_operand.vmem [shape: f32[1,8], index: 6, kind: input, shape index: {}]   ;;  %s1701_s7 = inlined_call_operand.vmem [shape: f32[8,8], index: 7, kind: output, shape index: {0}]   ;;  %s1702_s8 = inlined_call_operand.vmem [shape: f32[8,8], index: 8, kind: output, shape index: {1}]  }
   0x1   :  { %v1327_v0 = vld [vmem:[%s1694_s2 + $0x4] ss:$8 sps:$4 sm:$0xff]   ;;  %138 = vmatprep.mubr.bf16.mxu0 %v1274_v1  ;;  %292 = vmatprep.mubr.bf16.mxu1 %v1274_v1  ;;  %v1334_v2 = vld [vmem:[%s1694_s2] ss:$8 sps:$4 sm:$0xff]   ;;  %v1349_v5 = vld [vmem:[%s1694_s2 + $0x14] ss:$8 sps:$4 sm:$0xff]  }
   0x2   :  { %1177 = vset.pattern.permute.xlu1 %v1274_v1  ;;  %1176 = vset.pattern.permute.xlu0 %v1274_v1  ;;  %v1181_v3 = vld [vmem:[%s1695_s1 + $0x4] ss:$8 sps:$4 sm:$0xff]   ;;  %v1183_v4 = vld [vmem:[%s1695_s1] ss:$8 sps:$4 sm:$0xff]   ;;  %v1354_v6 = vld [vmem:[%s1694_s2 + $0x10] ss:$8 sps:$4 sm:$0xff]  }
   0x3   :  { %260 = vmatprep.subr.bf16.mxu1 %v1327_v0  ;;  %106 = vmatprep.subr.bf16.mxu0 %v1181_v3  ;;  %v1187_v7 = vld [vmem:[%s1695_s1 + $0x14] ss:$8 sps:$4 sm:$0xff]   ;;  %v1189_v8 = vld [vmem:[%s1695_s1 + $0x10] ss:$8 sps:$4 sm:$0xff]   ;;  %v1366_v9 = vld [vmem:[%s1694_s2 + $0x24] ss:$8 sps:$4 sm:$0xff]  }
   0x4   :  { %261 = vmatpush1.bf16.msra.mxu1 %v1334_v2  ;;  %107 = vmatpush1.bf16.msra.mxu0 %v1183_v4  ;;  %v1372_v10 = vld [vmem:[%s1694_s2 + $0x20] ss:$8 sps:$4 sm:$0xff]   ;;  %v1381_v12 = vld [vmem:[%s1694_s2 + $0x34] ss:$8 sps:$4 sm:$0xff]   ;;  %v1388_v13 = vld [vmem:[%s1694_s2 + $0x30] ss:$8 sps:$4 sm:$0xff]  }
   0x5   :  { %262 = vmatprep.subr.bf16.mxu1 %v1349_v5  ;;  %108 = vmatprep.subr.bf16.mxu0 %v1187_v7  ;;  %v1193_v11 = vld [vmem:[%s1696_s0] sm:$0xff]   ;;  %v44_v15 = vshrl.u32 %v43_v14, 7  ;;  %v204_v19 = vand.u32 127, %v43_v14  ;;  %vm256_vm2 = vcmask 523264   ;;  %vm327_vm3 = vcmask 523520  }
   0x6   :  { %v41_v17 = vld [vmem:[%s1697_s3] sm:$0x3]  ;;  %s1276_s3 = smov 64   ;;  %vm1278_vm4 = vmmov 0   ;;  %vm1098_vm5 = vcmask 64512  }
   0x7   :  { %v45_v16 = vsub.s32 0, %v44_v15  ;;  %v49_v18 = vsub.s32 1, %v44_v15  ;;  %v1420_v23 = vadd.s32 128, %v204_v19  ;;  %v1199_v19 = vld [vmem:[%s1696_s0 + $0x18] sm:$0xff]  }
   0x8   :  { %263 = vmatpush1.bf16.msra.mxu1 %v1354_v6  ;;  %109 = vmatpush1.bf16.msra.mxu0 %v1189_v8 }
   0x9   :  { %264 = vmatprep.subr.bf16.mxu1 %v1366_v9  ;;  %415 = vmatprep.subr.bf16.mxu0 %v1327_v0  ;;  %v1416_v20 = vrot.slane %v41_v17, %v45_v16  ;;  %v1418_v22 = vrot.slane %v41_v17, %v49_v18  ;;  %vm209_vm1 = vcmp.lt.s32.totalorder %v1420_v23, 192  ;;  %v1197_v17 = vld [vmem:[%s1696_s0 + $0x8] sm:$0xff]   ;;  %v1198_v18 = vld [vmem:[%s1696_s0 + $0x10] sm:$0xff]  }
   0xa   :  { %v1427_v32 = vsel %vm209_vm1, 1.0, %v1275_v31 }
   0xb   :  { %1128 = vmatmul.mubr.msk.bf16.vlgmr.msra.gmra.mrb[0].mxu0 %vm93_vm0, %v1193_v11 }
   0xc   :  { %265 = vmatpush1.bf16.msra.mxu1 %v1372_v10  ;;  %416 = vmatpush1.bf16.msra.mxu0 %v1334_v2 }
   0xd   :  { %266 = vmatprep.subr.bf16.mxu1 %v1381_v12  ;;  %148 = vmatprep.mubr.bf16.mxu0 %v1274_v1 }
   0xe   :  { %417 = vmatprep.subr.bf16.mxu0 %v1349_v5 }
  0x10   :  { %267 = vmatpush1.bf16.msra.mxu1 %v1388_v13  ;;  %418 = vmatpush1.bf16.msra.mxu0 %v1354_v6 }
  0x11   :  { %338 = vmatprep.subr.bf16.mxu1 %v1327_v0  ;;  %419 = vmatprep.subr.bf16.mxu0 %v1366_v9 }
  0x13   :  { %293 = vmatmul.mubr.bf16.vlgmr.msra.gmra.mrb[0].mxu1 %v1274_v1  ;;  %1129 = vmatmul.mubr.msk.bf16.gmra.mrb[4].mxu0 %vm93_vm0, %v1197_v17 }
  0x14   :  { %339 = vmatpush1.bf16.msra.mxu1 %v1334_v2  ;;  %370 = vmatprep.mubr.bf16.mxu1 %v1274_v1 }
  0x15   :  { %340 = vmatprep.subr.bf16.mxu1 %v1349_v5  ;;  %420 = vmatpush1.bf16.msra.mxu0 %v1372_v10 }
  0x16   :  { %421 = vmatprep.subr.bf16.mxu0 %v1381_v12  ;;  %158 = vmatprep.mubr.bf16.mxu0 %v1274_v1 }
  0x18   :  { %341 = vmatpush1.bf16.msra.mxu1 %v1354_v6 }
  0x19   :  { %342 = vmatprep.subr.bf16.mxu1 %v1366_v9  ;;  %422 = vmatpush1.bf16.msra.mxu0 %v1388_v13 }
  0x1a   :  { %569 = vmatprep.subr.bf16.mxu0 %v1327_v0 }
  0x1b   :  { %1130 = vmatmul.mubr.msk.bf16.gmra.mrb[8].mxu0 %vm93_vm0, %v1198_v18 }
  0x1c   :  { %343 = vmatpush1.bf16.msra.mxu1 %v1372_v10  ;;  %168 = vmatprep.mubr.bf16.mxu0 %v1274_v1 }
  0x1d   :  { %344 = vmatprep.subr.bf16.mxu1 %v1381_v12 }
  0x20   :  { %345 = vmatpush1.bf16.msra.mxu1 %v1388_v13 }
  0x21   :  { %492 = vmatprep.subr.bf16.mxu1 %v1327_v0 }
  0x23   :  { %1131 = vmatmul.mubr.msk.bf16.gmra.mrb[12].mxu0 %vm93_vm0, %v1199_v19 }
  0x24   :  { %447 = vmatprep.mubr.bf16.mxu0 %v1274_v1 }
  0xde   :  { %v140_v21 = vpop.f32.mrb[0].mxu0 }
  0xdf   :  { %v142_v24 = vpop.f32.mrb[1].mxu0  ;;  %v141_v26 = vadd.f32 %v140_v21, %v1416_v20 }
  0xe0   :  { %v144_v25 = vpop.f32.mrb[2].mxu0  ;;  %v143_v28 = vadd.f32 %v142_v24, %v1418_v22 }
  0xe1   :  { %v146_v27 = vpop.f32.mrb[3].mxu0  ;;  %v145_v54 = vadd.f32 %v144_v25, %v1416_v20 }
  0xe2   :  { %v147_v55 = vadd.f32 %v146_v27, %v1418_v22 }
  0xe6   :  { %v294_v29 = vpop.f32.mrb[0].mxu1 }
  0xe7   :  { %v301_v30 = vadd.f32 %v294_v29, %v141_v26  ;;  %v296_v33 = vpop.f32.mrb[1].mxu1  ;;  %v150_v29 = vpop.f32.mrb[4].mxu0 }
  0xe8   :  { %v302_v34 = vadd.f32 %v296_v33, %v143_v28  ;;  %v298_v35 = vpop.f32.mrb[2].mxu1 }
  0xe9   :  { %v303_v36 = vmul.f32 0.5, %v301_v30  ;;  %v299_v37 = vpop.f32.mrb[3].mxu1  ;;  %v152_v30 = vpop.f32.mrb[5].mxu0 }
  0xea   :  { %v304_v38 = vmul.f32 %v302_v34, %v1427_v32  ;;  %v154_v31 = vpop.f32.mrb[6].mxu0 }
  0xeb   :  { %1204 = vtanh.f32 %v303_v36  ;;  %v156_v33 = vpop.f32.mrb[7].mxu0 }
  0xec   :  { %1206 = vtanh.f32 %v304_v38 }
  0xee   :  { %v1474_v34 = vpop.f32.mrb[8].mxu0 }
  0xef   :  { %v1476_v35 = vpop.f32.mrb[9].mxu0 }
  0xf0   :  { %v1478_v36 = vpop.f32.mrb[10].mxu0 }
  0xf1   :  { %v1480_v37 = vpop.f32.mrb[11].mxu0 }
  0xf5   :  { %v1205_v39 = vpop.eup %1204 }
  0xf6   :  { %v1207_v40 = vpop.eup %1206  ;;  %v307_v41 = vmul.f32 0.5, %v1205_v39  ;;  %v1482_v38 = vpop.f32.mrb[12].mxu0 }
  0xf7   :  { %v308_v42 = vmul.f32 0.5, %v1207_v40  ;;  %v1484_v39 = vpop.f32.mrb[13].mxu0 }
  0xf8   :  { %v309_v44 = vadd.f32 0.5, %v307_v41 }
  0xf9   :  { %v310_v43 = vadd.f32 0.5, %v308_v42 }
  0xfa   :  { %v313_v47 = vmul.f32 0.0, %v309_v44 }
  0xfb   :  { %v312_v45 = vsel %vm209_vm1, %v1207_v40, %v310_v43  ;;  %v1486_v40 = vpop.f32.mrb[14].mxu0  ;;  %v151_v43 = vadd.f32 %v150_v29, %v1416_v20 }
  0xfc   :  { %v314_v46 = vmul.f32 %v312_v45, %v309_v44  ;;  %v1488_v41 = vpop.f32.mrb[15].mxu0  ;;  %v153_v44 = vadd.f32 %v152_v30, %v1418_v22 }
  0xfe   :  { %316 = vrot.lane.b32.xlu0 %v314_v46, %s1276_s3 }
 0x170   :  { %v317_v48 = vpop.permute.xlu0 %316 }
 0x171   :  { %v319_v49 = vadd.f32 %v317_v48, %v313_v47 }
 0x173   :  { %1208 = vtanh.f32 %v319_v49 }
 0x17d   :  { %v1209_v50 = vpop.eup %1208 }
 0x17e   :  { %v1433_v51 = vmul.f32 %v1209_v50, %v312_v45 }
 0x180   :  { %v331_v52 = vpack.c.bf16 %v1433_v51, %v1433_v51 }
 0x182   :  { %333 = vrot.lane.b32.xlu0 %v331_v52, %s1276_s3 }
 0x1f4   :  { %v334_v53 = vpop.permute.xlu0 %333 }
 0x1f5   :  { %1140 = vmatmul.mubr.msk.bf16.vlgmr.msra.gmra.mrb[4].mxu1 %vm256_vm2, %v334_v53 }
 0x1f6   :  { %493 = vmatpush1.bf16.msra.mxu1 %v1334_v2  ;;  %524 = vmatprep.mubr.bf16.mxu1 %v1274_v1 }
 0x1f7   :  { %494 = vmatprep.subr.bf16.mxu1 %v1349_v5 }
 0x1fa   :  { %495 = vmatpush1.bf16.msra.mxu1 %v1354_v6 }
 0x1fb   :  { %496 = vmatprep.subr.bf16.mxu1 %v1366_v9 }
 0x1fe   :  { %497 = vmatpush1.bf16.msra.mxu1 %v1372_v10 }
 0x1ff   :  { %498 = vmatprep.subr.bf16.mxu1 %v1381_v12 }
 0x202   :  { %499 = vmatpush1.bf16.msra.mxu1 %v1388_v13 }
 0x203   :  { %646 = vmatprep.subr.bf16.mxu1 %v1327_v0 }
 0x2c8   :  { %v372_v56 = vpop.f32.mrb[4].mxu1 }
 0x2c9   :  { %v379_v57 = vadd.f32 %v372_v56, %v145_v54  ;;  %v374_v58 = vpop.f32.mrb[5].mxu1 }
 0x2ca   :  { %v380_v59 = vadd.f32 %v374_v58, %v147_v55  ;;  %v376_v60 = vpop.f32.mrb[6].mxu1 }
 0x2cb   :  { %v381_v61 = vmul.f32 0.5, %v379_v57  ;;  %v377_v62 = vpop.f32.mrb[7].mxu1 }
 0x2cc   :  { %v382_v63 = vmul.f32 %v380_v59, %v1427_v32 }
 0x2cd   :  { %1210 = vtanh.f32 %v381_v61 }
 0x2ce   :  { %1212 = vtanh.f32 %v382_v63 }
 0x2d7   :  { %v1211_v3 = vpop.eup %1210 }
 0x2d8   :  { %v1213_v4 = vpop.eup %1212  ;;  %v385_v7 = vmul.f32 0.5, %v1211_v3 }
 0x2d9   :  { %v386_v8 = vmul.f32 0.5, %v1213_v4 }
 0x2da   :  { %v387_v14 = vadd.f32 0.5, %v385_v7 }
 0x2db   :  { %v388_v11 = vadd.f32 0.5, %v386_v8 }
 0x2dc   :  { %v391_v21 = vmul.f32 %v387_v14, %v319_v49 }
 0x2dd   :  { %v390_v15 = vsel %vm209_vm1, %v1213_v4, %v388_v11 }
 0x2de   :  { %v392_v16 = vmul.f32 %v390_v15, %v387_v14  ;;  %v155_v14 = vadd.f32 %v154_v31, %v1416_v20 }
 0x2e0   :  { %394 = vrot.lane.b32.xlu1 %v392_v16, %s1276_s3 }
 0x352   :  { %v395_v24 = vpop.permute.xlu1 %394 }
 0x353   :  { %v397_v25 = vadd.f32 %v395_v24, %v391_v21 }
 0x355   :  { %1214 = vtanh.f32 %v397_v25 }
 0x35f   :  { %v1215_v26 = vpop.eup %1214 }
 0x360   :  { %v1469_v27 = vmul.f32 %v1215_v26, %v390_v15  ;;  %v157_v15 = vadd.f32 %v156_v33, %v1418_v22 }
 0x362   :  { %v408_v28 = vpack.c.bf16 %v1469_v27, %v1469_v27 }
 0x364   :  { %410 = vrot.lane.b32.xlu1 %v408_v28, %s1276_s3 }
 0x3d6   :  { %v411_v42 = vpop.permute.xlu1 %410 }
 0x3d7   :  { %1141 = vmatmul.mubr.msk.bf16.vlgmr.msra.gmra.mrb[16].mxu0 %vm256_vm2, %v411_v42 }
 0x3d8   :  { %570 = vmatpush1.bf16.msra.mxu0 %v1334_v2  ;;  %601 = vmatprep.mubr.bf16.mxu0 %v1274_v1 }
 0x3d9   :  { %571 = vmatprep.subr.bf16.mxu0 %v1349_v5 }
 0x3dc   :  { %572 = vmatpush1.bf16.msra.mxu0 %v1354_v6 }
 0x3dd   :  { %573 = vmatprep.subr.bf16.mxu0 %v1366_v9 }
 0x3e0   :  { %574 = vmatpush1.bf16.msra.mxu0 %v1372_v10 }
 0x3e1   :  { %575 = vmatprep.subr.bf16.mxu0 %v1381_v12 }
 0x3e4   :  { %576 = vmatpush1.bf16.msra.mxu0 %v1388_v13 }
 0x3e5   :  { %723 = vmatprep.subr.bf16.mxu0 %v1327_v0 }
 0x4aa   :  { %v449_v45 = vpop.f32.mrb[16].mxu0 }
 0x4ab   :  { %v456_v46 = vadd.f32 %v449_v45, %v151_v43  ;;  %v451_v47 = vpop.f32.mrb[17].mxu0 }
 0x4ac   :  { %v457_v48 = vadd.f32 %v451_v47, %v153_v44  ;;  %v453_v49 = vpop.f32.mrb[18].mxu0 }
 0x4ad   :  { %v458_v50 = vmul.f32 0.5, %v456_v46  ;;  %v454_v52 = vpop.f32.mrb[19].mxu0 }
 0x4ae   :  { %v459_v53 = vmul.f32 %v457_v48, %v1427_v32  ;;  %v161_v52 = vadd.f32 %v1474_v34, %v1416_v20 }
 0x4af   :  { %1216 = vtanh.f32 %v458_v50 }
 0x4b0   :  { %1218 = vtanh.f32 %v459_v53  ;;  %v163_v53 = vadd.f32 %v1476_v35, %v1418_v22 }
 0x4b9   :  { %v1217_v54 = vpop.eup %1216 }
 0x4ba   :  { %v1219_v55 = vpop.eup %1218  ;;  %v462_v56 = vmul.f32 0.5, %v1217_v54 }
 0x4bb   :  { %v463_v57 = vmul.f32 0.5, %v1219_v55 }
 0x4bc   :  { %v464_v59 = vadd.f32 0.5, %v462_v56 }
 0x4bd   :  { %v465_v58 = vadd.f32 0.5, %v463_v57 }
 0x4be   :  { %v468_v62 = vmul.f32 %v464_v59, %v397_v25 }
 0x4bf   :  { %v467_v60 = vsel %vm209_vm1, %v1219_v55, %v465_v58 }
 0x4c0   :  { %v469_v61 = vmul.f32 %v467_v60, %v464_v59 }
 0x4c2   :  { %471 = vrot.lane.b32.xlu0 %v469_v61, %s1276_s3 }
 0x534   :  { %v472_v63 = vpop.permute.xlu0 %471 }
 0x535   :  { %v474_v3 = vadd.f32 %v472_v63, %v468_v62 }
 0x537   :  { %1220 = vtanh.f32 %v474_v3 }
 0x541   :  { %v1221_v4 = vpop.eup %1220 }
 0x542   :  { %v1506_v7 = vmul.f32 %v1221_v4, %v467_v60 }
 0x544   :  { %v485_v8 = vpack.c.bf16 %v1506_v7, %v1506_v7 }
 0x546   :  { %487 = vrot.lane.b32.xlu1 %v485_v8, %s1276_s3 }
 0x5b8   :  { %v488_v11 = vpop.permute.xlu1 %487 }
 0x5b9   :  { %1142 = vmatmul.mubr.msk.bf16.vlgmr.msra.gmra.mrb[8].mxu1 %vm256_vm2, %v488_v11 }
 0x5ba   :  { %647 = vmatpush1.bf16.msra.mxu1 %v1334_v2  ;;  %678 = vmatprep.mubr.bf16.mxu1 %v1274_v1 }
 0x5bb   :  { %648 = vmatprep.subr.bf16.mxu1 %v1349_v5 }
 0x5be   :  { %649 = vmatpush1.bf16.msra.mxu1 %v1354_v6 }
 0x5bf   :  { %650 = vmatprep.subr.bf16.mxu1 %v1366_v9 }
 0x5c2   :  { %651 = vmatpush1.bf16.msra.mxu1 %v1372_v10 }
 0x5c3   :  { %652 = vmatprep.subr.bf16.mxu1 %v1381_v12 }
 0x5c6   :  { %653 = vmatpush1.bf16.msra.mxu1 %v1388_v13 }
 0x5c7   :  { %800 = vmatprep.subr.bf16.mxu1 %v1327_v0 }
 0x68c   :  { %v526_v16 = vpop.f32.mrb[8].mxu1 }
 0x68d   :  { %v533_v17 = vadd.f32 %v526_v16, %v155_v14  ;;  %v528_v18 = vpop.f32.mrb[9].mxu1 }
 0x68e   :  { %v534_v19 = vadd.f32 %v528_v18, %v157_v15  ;;  %v530_v21 = vpop.f32.mrb[10].mxu1 }
 0x68f   :  { %v535_v24 = vmul.f32 0.5, %v533_v17  ;;  %v531_v25 = vpop.f32.mrb[11].mxu1 }
 0x690   :  { %v536_v26 = vmul.f32 %v534_v19, %v1427_v32 }
 0x691   :  { %1222 = vtanh.f32 %v535_v24  ;;  %v165_v24 = vadd.f32 %v1478_v36, %v1416_v20 }
 0x692   :  { %1224 = vtanh.f32 %v536_v26 }
 0x69b   :  { %v1223_v28 = vpop.eup %1222 }
 0x69c   :  { %v1225_v29 = vpop.eup %1224  ;;  %v539_v30 = vmul.f32 0.5, %v1223_v28 }
 0x69d   :  { %v540_v42 = vmul.f32 0.5, %v1225_v29 }
 0x69e   :  { %v541_v43 = vadd.f32 0.5, %v539_v30 }
 0x69f   :  { %v542_v0 = vadd.f32 0.5, %v540_v42 }
 0x6a0   :  { %v545_v44 = vmul.f32 %v541_v43, %v474_v3 }
 0x6a1   :  { %v544_v31 = vsel %vm209_vm1, %v1225_v29, %v542_v0 }
 0x6a2   :  { %v546_v33 = vmul.f32 %v544_v31, %v541_v43 }
 0x6a4   :  { %548 = vrot.lane.b32.xlu0 %v546_v33, %s1276_s3 }
 0x716   :  { %v549_v45 = vpop.permute.xlu0 %548 }
 0x717   :  { %v551_v46 = vadd.f32 %v549_v45, %v545_v44 }
 0x719   :  { %1226 = vtanh.f32 %v551_v46 }
 0x723   :  { %v1227_v47 = vpop.eup %1226 }
 0x724   :  { %v1527_v48 = vmul.f32 %v1227_v47, %v544_v31 }
 0x726   :  { %v562_v49 = vpack.c.bf16 %v1527_v48, %v1527_v48 }
 0x728   :  { %564 = vrot.lane.b32.xlu1 %v562_v49, %s1276_s3  ;;  %v171_v49 = vadd.f32 %v1482_v38, %v1416_v20 }
 0x79a   :  { %v565_v50 = vpop.permute.xlu1 %564 }
 0x79b   :  { %1143 = vmatmul.mubr.msk.bf16.vlgmr.msra.gmra.mrb[20].mxu0 %vm256_vm2, %v565_v50  ;;  %v173_v50 = vadd.f32 %v1484_v39, %v1418_v22 }
 0x79c   :  { %724 = vmatpush1.bf16.msra.mxu0 %v1334_v2  ;;  %755 = vmatprep.mubr.bf16.mxu0 %v1274_v1 }
 0x79d   :  { %725 = vmatprep.subr.bf16.mxu0 %v1349_v5 }
 0x7a0   :  { %726 = vmatpush1.bf16.msra.mxu0 %v1354_v6 }
 0x7a1   :  { %727 = vmatprep.subr.bf16.mxu0 %v1366_v9 }
 0x7a4   :  { %728 = vmatpush1.bf16.msra.mxu0 %v1372_v10 }
 0x7a5   :  { %729 = vmatprep.subr.bf16.mxu0 %v1381_v12 }
 0x7a8   :  { %730 = vmatpush1.bf16.msra.mxu0 %v1388_v13 }
 0x86e   :  { %v603_v54 = vpop.f32.mrb[20].mxu0 }
 0x86f   :  { %v610_v55 = vadd.f32 %v603_v54, %v161_v52  ;;  %v605_v56 = vpop.f32.mrb[21].mxu0 }
 0x870   :  { %v611_v57 = vadd.f32 %v605_v56, %v163_v53  ;;  %v607_v58 = vpop.f32.mrb[22].mxu0 }
 0x871   :  { %v612_v59 = vmul.f32 0.5, %v610_v55  ;;  %v608_v60 = vpop.f32.mrb[23].mxu0 }
 0x872   :  { %v613_v61 = vmul.f32 %v611_v57, %v1427_v32 }
 0x873   :  { %1228 = vtanh.f32 %v612_v59 }
 0x874   :  { %1230 = vtanh.f32 %v613_v61 }
 0x87d   :  { %v1229_v62 = vpop.eup %1228 }
 0x87e   :  { %v1231_v63 = vpop.eup %1230  ;;  %v616_v3 = vmul.f32 0.5, %v1229_v62 }
 0x87f   :  { %v617_v4 = vmul.f32 0.5, %v1231_v63 }
 0x880   :  { %v618_v34 = vadd.f32 0.5, %v616_v3 }
 0x881   :  { %v619_v8 = vadd.f32 0.5, %v617_v4 }
 0x882   :  { %v622_v14 = vmul.f32 %v618_v34, %v551_v46 }
 0x883   :  { %v621_v35 = vsel %vm209_vm1, %v1231_v63, %v619_v8 }
 0x884   :  { %v623_v11 = vmul.f32 %v621_v35, %v618_v34 }
 0x886   :  { %625 = vrot.lane.b32.xlu0 %v623_v11, %s1276_s3 }
 0x8f8   :  { %v626_v15 = vpop.permute.xlu0 %625 }
 0x8f9   :  { %v628_v16 = vadd.f32 %v626_v15, %v622_v14 }
 0x8fb   :  { %1232 = vtanh.f32 %v628_v16 }
 0x905   :  { %v1233_v17 = vpop.eup %1232 }
 0x906   :  { %v1549_v18 = vmul.f32 %v1233_v17, %v621_v35 }
 0x908   :  { %v639_v19 = vpack.c.bf16 %v1549_v18, %v1549_v18 }
 0x90a   :  { %641 = vrot.lane.b32.xlu1 %v639_v19, %s1276_s3 }
 0x97c   :  { %v642_v21 = vpop.permute.xlu1 %641 }
 0x97d   :  { %1144 = vmatmul.mubr.msk.bf16.vlgmr.msra.gmra.mrb[12].mxu1 %vm256_vm2, %v642_v21 }
 0x97e   :  { %801 = vmatpush1.bf16.msra.mxu1 %v1334_v2  ;;  %832 = vmatprep.mubr.bf16.mxu1 %v1274_v1  ;;  %v167_v2 = vadd.f32 %v1480_v37, %v1418_v22 }
 0x97f   :  { %802 = vmatprep.subr.bf16.mxu1 %v1349_v5 }
 0x982   :  { %803 = vmatpush1.bf16.msra.mxu1 %v1354_v6 }
 0x983   :  { %804 = vmatprep.subr.bf16.mxu1 %v1366_v9 }
 0x986   :  { %805 = vmatpush1.bf16.msra.mxu1 %v1372_v10 }
 0x987   :  { %806 = vmatprep.subr.bf16.mxu1 %v1381_v12 }
 0x98a   :  { %807 = vmatpush1.bf16.msra.mxu1 %v1388_v13 }
 0xa50   :  { %v680_v25 = vpop.f32.mrb[12].mxu1 }
 0xa51   :  { %v687_v1 = vadd.f32 %v680_v25, %v165_v24  ;;  %v682_v26 = vpop.f32.mrb[13].mxu1 }
 0xa52   :  { %v688_v5 = vadd.f32 %v682_v26, %v167_v2  ;;  %v684_v28 = vpop.f32.mrb[14].mxu1 }
 0xa53   :  { %v689_v6 = vmul.f32 0.5, %v687_v1  ;;  %v685_v29 = vpop.f32.mrb[15].mxu1 }
 0xa54   :  { %v690_v9 = vmul.f32 %v688_v5, %v1427_v32 }
 0xa55   :  { %1234 = vtanh.f32 %v689_v6 }
 0xa56   :  { %1236 = vtanh.f32 %v690_v9 }
 0xa5f   :  { %v1235_v10 = vpop.eup %1234 }
 0xa60   :  { %v1237_v12 = vpop.eup %1236  ;;  %v693_v13 = vmul.f32 0.5, %v1235_v10 }
 0xa61   :  { %v694_v30 = vmul.f32 0.5, %v1237_v12 }
 0xa62   :  { %v695_v36 = vadd.f32 0.5, %v693_v13 }
 0xa63   :  { %v696_v42 = vadd.f32 0.5, %v694_v30 }
 0xa64   :  { %v699_v43 = vmul.f32 %v695_v36, %v628_v16 }
 0xa65   :  { %v698_v37 = vsel %vm209_vm1, %v1237_v12, %v696_v42 }
 0xa66   :  { %v700_v0 = vmul.f32 %v698_v37, %v695_v36 }
 0xa68   :  { %702 = vrot.lane.b32.xlu0 %v700_v0, %s1276_s3  ;;  %v1147_v0 = vld [vmem:[%s1698_s4] ss:$0 sm:$0xff] }
 0xada   :  { %v703_v31 = vpop.permute.xlu0 %702 }
 0xadb   :  { %v705_v33 = vadd.f32 %v703_v31, %v699_v43 }
 0xadd   :  { %1238 = vtanh.f32 %v705_v33 }
 0xae7   :  { %v1239_v44 = vpop.eup %1238 }
 0xae8   :  { %v1571_v45 = vmul.f32 %v1239_v44, %v698_v37 }
 0xaea   :  { %v716_v46 = vpack.c.bf16 %v1571_v45, %v1571_v45 }
 0xaec   :  { %718 = vrot.lane.b32.xlu1 %v716_v46, %s1276_s3 }
 0xb5e   :  { %v719_v47 = vpop.permute.xlu1 %718 }
 0xb5f   :  { %1145 = vmatmul.mubr.msk.bf16.vlgmr.msra.gmra.mrb[24].mxu0 %vm256_vm2, %v719_v47 }
 0xc32   :  { %v757_v52 = vpop.f32.mrb[24].mxu0 }
 0xc33   :  { %v764_v53 = vadd.f32 %v757_v52, %v171_v49  ;;  %v759_v54 = vpop.f32.mrb[25].mxu0 }
 0xc34   :  { %v765_v55 = vadd.f32 %v759_v54, %v173_v50  ;;  %v761_v56 = vpop.f32.mrb[26].mxu0 }
 0xc35   :  { %v766_v57 = vmul.f32 0.5, %v764_v53  ;;  %v762_v58 = vpop.f32.mrb[27].mxu0 }
 0xc36   :  { %v767_v59 = vmul.f32 %v765_v55, %v1427_v32 }
 0xc37   :  { %1240 = vtanh.f32 %v766_v57 }
 0xc38   :  { %1242 = vtanh.f32 %v767_v59 }
 0xc41   :  { %v1241_v60 = vpop.eup %1240 }
 0xc42   :  { %v1243_v61 = vpop.eup %1242  ;;  %v770_v62 = vmul.f32 0.5, %v1241_v60 }
 0xc43   :  { %v771_v63 = vmul.f32 0.5, %v1243_v61 }
 0xc44   :  { %v772_v38 = vadd.f32 0.5, %v770_v62 }
 0xc45   :  { %v773_v3 = vadd.f32 0.5, %v771_v63 }
 0xc46   :  { %v776_v8 = vmul.f32 %v772_v38, %v705_v33 }
 0xc47   :  { %v775_v39 = vsel %vm209_vm1, %v1243_v61, %v773_v3 }
 0xc48   :  { %v777_v4 = vmul.f32 %v775_v39, %v772_v38 }
 0xc4a   :  { %779 = vrot.lane.b32.xlu0 %v777_v4, %s1276_s3 }
 0xcbc   :  { %v780_v34 = vpop.permute.xlu0 %779 }
 0xcbd   :  { %v782_v35 = vadd.f32 %v780_v34, %v776_v8 }
 0xcbf   :  { %1244 = vtanh.f32 %v782_v35 }
 0xcc9   :  { %v1245_v11 = vpop.eup %1244 }
 0xcca   :  { %v784_v14 = vmul.f32 %v1245_v11, %v775_v39 }
 0xccc   :  { %v793_v15 = vpack.c.bf16 %v784_v14, %v784_v14 }
 0xcce   :  { %795 = vrot.lane.b32.xlu1 %v793_v15, %s1276_s3 }
 0xcd2   :  { %323 = vrot.lane.b32.xlu1 %v1433_v51, %s1276_s3  ;;  %v175_v51 = vadd.f32 %v1486_v40, %v1416_v20 }
 0xcd6   :  { %478 = vrot.lane.b32.xlu1 %v1506_v7, %s1276_s3  ;;  %v177_v7 = vadd.f32 %v1488_v41, %v1418_v22 }
 0xcda   :  { %632 = vrot.lane.b32.xlu1 %v1549_v18, %s1276_s3 }
 0xcde   :  { %786 = vrot.lane.b32.xlu1 %v784_v14, %s1276_s3 }
 0xd40   :  { %v796_v16 = vpop.permute.xlu1 %795 }
 0xd41   :  { %1146 = vmatmul.mubr.msk.bf16.vlgmr.msra.gmra.mrb[16].mxu1 %vm256_vm2, %v796_v16 }
 0xd44   :  { %v324_v17 = vpop.permute.xlu1 %323 }
 0xd45   :  { %326 = vst.msk [vmem:[#allocation3] sm:$0xff] %vm93_vm0, %v324_v17 }
 0xd46   :  { %328 = vst.msk [vmem:[#allocation3 + $0x38] sm:$0xff] %vm327_vm3, %v324_v17 }
 0xd48   :  { %v479_v19 = vpop.permute.xlu1 %478 }
 0xd49   :  { %481 = vst.msk [vmem:[#allocation3 + $0x10] sm:$0xff] %vm93_vm0, %v479_v19 }
 0xd4a   :  { %482 = vst.msk [vmem:[#allocation3 + $0x28] sm:$0xff] %vm327_vm3, %v479_v19 }
 0xe14   :  { %v834_v18 = vpop.f32.mrb[16].mxu1 }
 0xe15   :  { %v841_v21 = vadd.f32 %v834_v18, %v175_v51  ;;  %v836_v24 = vpop.f32.mrb[17].mxu1 }
 0xe16   :  { %v842_v2 = vadd.f32 %v836_v24, %v177_v7  ;;  %v838_v25 = vpop.f32.mrb[18].mxu1 }
 0xe17   :  { %v843_v1 = vmul.f32 0.5, %v841_v21  ;;  %v839_v26 = vpop.f32.mrb[19].mxu1 }
 0xe18   :  { %v844_v5 = vmul.f32 %v842_v2, %v1427_v32  ;;  %v633_v32 = vpop.permute.xlu1 %632 }
 0xe19   :  { %1246 = vtanh.f32 %v843_v1 }
 0xe1a   :  { %1248 = vtanh.f32 %v844_v5 }
 0xe1c   :  { %v787_v23 = vpop.permute.xlu1 %786 }
 0xe23   :  { %v1247_v28 = vpop.eup %1246 }
 0xe24   :  { %v1249_v6 = vpop.eup %1248  ;;  %v847_v29 = vmul.f32 0.5, %v1247_v28 }
 0xe25   :  { %v848_v9 = vmul.f32 0.5, %v1249_v6 }
 0xe26   :  { %v849_v20 = vadd.f32 0.5, %v847_v29 }
 0xe27   :  { %v850_v10 = vadd.f32 0.5, %v848_v9 }
 0xe28   :  { %v853_v41 = vmul.f32 %v849_v20, %v782_v35 }
 0xe29   :  { %v852_v22 = vsel %vm209_vm1, %v1249_v6, %v850_v10 }
 0xe2a   :  { %v854_v40 = vmul.f32 %v852_v22, %v849_v20 }
 0xe2c   :  { %856 = vrot.lane.b32.xlu0 %v854_v40, %s1276_s3 }
 0xe30   :  { %401 = vrot.lane.b32.xlu0 %v1469_v27, %s1276_s3 }
 0xe34   :  { %555 = vrot.lane.b32.xlu0 %v1527_v48, %s1276_s3 }
 0xe38   :  { %709 = vrot.lane.b32.xlu0 %v1571_v45, %s1276_s3 }
 0xe9e   :  { %v857_v12 = vpop.permute.xlu0 %856 }
 0xe9f   :  { %v859_v13 = vadd.f32 %v857_v12, %v853_v41 }
 0xea1   :  { %1250 = vtanh.f32 %v859_v13 }
 0xea2   :  { %v402_v30 = vpop.permute.xlu0 %401 }
 0xea3   :  { %404 = vst.msk [vmem:[#allocation3 + $0x8] sm:$0xff] %vm93_vm0, %v402_v30 }
 0xea4   :  { %405 = vst.msk [vmem:[#allocation3 + $0x30] sm:$0xff] %vm327_vm3, %v402_v30  ;;  %790 = vst.msk [vmem:[#allocation3 + $0x8] sm:$0xff] %vm327_vm3, %v787_v23 }
 0xea5   :  { %789 = vst.msk [vmem:[#allocation3 + $0x30] sm:$0xff] %vm93_vm0, %v787_v23 }
 0xea6   :  { %v556_v27 = vpop.permute.xlu0 %555 }
 0xea7   :  { %558 = vst.msk [vmem:[#allocation3 + $0x18] sm:$0xff] %vm93_vm0, %v556_v27 }
 0xea8   :  { %559 = vst.msk [vmem:[#allocation3 + $0x20] sm:$0xff] %vm327_vm3, %v556_v27  ;;  %636 = vst.msk [vmem:[#allocation3 + $0x18] sm:$0xff] %vm327_vm3, %v633_v32 }
 0xea9   :  { %635 = vst.msk [vmem:[#allocation3 + $0x20] sm:$0xff] %vm93_vm0, %v633_v32 }
 0xeaa   :  { %v710_v48 = vpop.permute.xlu0 %709 }
 0xeab   :  { %v1251_v42 = vpop.eup %1250  ;;  %712 = vst.msk [vmem:[#allocation3 + $0x28] sm:$0xff] %vm93_vm0, %v710_v48  ;;  %v1634_v46 = vld [vmem:[#allocation3 + $0x8] sm:$0xff] }
 0xeac   :  { %713 = vst.msk [vmem:[#allocation3 + $0x10] sm:$0xff] %vm327_vm3, %v710_v48  ;;  %v861_v36 = vmul.f32 %v1251_v42, %v852_v22  ;;  %v884_v47 = vmul.f32 %v1147_v0, %v1634_v46  ;;  %v1645_v56 = vld [vmem:[#allocation3 + $0x30] sm:$0xff] }
 0xead   :  { %v889_v58 = vmul.f32 %v1147_v0, %v1645_v56 }
 0xeae   :  { %863 = vrot.lane.b32.xlu0 %v861_v36, %s1276_s3  ;;  %v894_v50 = vsel %vm256_vm2, %v884_v47, 0.0 }
 0xeaf   :  { %v1623_v37 = vld [vmem:[#allocation3 + $0x18] sm:$0xff]  ;;  %v909_v59 = vsel %vm256_vm2, %v889_v58, 0.0  ;;  %v1202_v58 = vld [vmem:[%s1699_s5 + $0x10] sm:$0xff]  }
 0xeb0   :  { %v886_v43 = vmul.f32 %v1147_v0, %v1623_v37  ;;  %v1641_v53 = vld [vmem:[#allocation3 + $0x20] sm:$0xff] }
 0xeb1   :  { %v887_v55 = vmul.f32 %v1147_v0, %v1641_v53 }
 0xeb2   :  { %v900_v31 = vsel %vm256_vm2, %v886_v43, 0.0  ;;  %v1630_v33 = vld [vmem:[#allocation3 + $0x28] sm:$0xff] }
 0xeb3   :  { %901 = vadd.xlane.f32.xlu1 %v900_v31  ;;  %v888_v44 = vmul.f32 %v1147_v0, %v1630_v33  ;;  %v1637_v49 = vld [vmem:[#allocation3 + $0x10] sm:$0xff]  ;;  %v903_v57 = vsel %vm256_vm2, %v887_v55, 0.0  ;;  %v1200_v55 = vld [vmem:[%s1699_s5] sm:$0xff]  }
 0xeb4   :  { %v885_v52 = vmul.f32 %v1147_v0, %v1637_v49 }
 0xeb5   :  { %v906_v45 = vsel %vm256_vm2, %v888_v44, 0.0 }
 0xeb6   :  { %v897_v54 = vsel %vm256_vm2, %v885_v52, 0.0 }
 0xeb7   :  { %907 = vadd.xlane.f32.xlu1 %v906_v45 }
 0xecd   :  { %895 = vadd.xlane.f32.xlu0 %v894_v50 }
 0xed1   :  { %898 = vadd.xlane.f32.xlu0 %v897_v54  ;;  %v1277_v54 = vmov 0.0  }
 0xed2   :  { %1159 = vmatprep.subr.bf16.mxu0 %v1277_v54  ;;  %1167 = vmatprep.mubr.msk.bf16.mxu0 %vm1278_vm4, %v1277_v54 }
 0xed3   :  { %1160 = vmatpush3.bf16.msra.mxu0 %v1200_v55 }
 0xed4   :  { %1161 = vmatprep.subr.bf16.mxu0 %v1277_v54 }
 0xed5   :  { %904 = vadd.xlane.f32.xlu0 %v903_v57  ;;  %v1201_v57 = vld [vmem:[%s1699_s5 + $0x8] sm:$0xff]  }
 0xed7   :  { %1162 = vmatpush3.bf16.msra.mxu0 %v1201_v57 }
 0xed8   :  { %1163 = vmatprep.subr.bf16.mxu0 %v1277_v54 }
 0xed9   :  { %910 = vadd.xlane.f32.xlu0 %v909_v59  ;;  %v1203_v59 = vld [vmem:[%s1699_s5 + $0x18] sm:$0xff]  }
 0xedb   :  { %1164 = vmatpush3.bf16.msra.mxu0 %v1202_v58 }
 0xedc   :  { %1165 = vmatprep.subr.bf16.mxu0 %v1277_v54 }
 0xedf   :  { %1166 = vmatpush3.bf16.msra.mxu0 %v1203_v59 }
 0xf20   :  { %v864_v60 = vpop.permute.xlu0 %863 }
 0xf21   :  { %866 = vst.msk [vmem:[#allocation3 + $0x38] sm:$0xff] %vm93_vm0, %v864_v60 }
 0xf22   :  { %867 = vst.msk [vmem:[#allocation3] sm:$0xff] %vm327_vm3, %v864_v60 }
 0xf28   :  { %v1654_v62 = vld [vmem:[#allocation3 + $0x38] sm:$0xff] }
 0xf29   :  { %v1652_v61 = vld [vmem:[#allocation3] sm:$0xff]  ;;  %v890_v38 = vmul.f32 %v1147_v0, %v1654_v62 }
 0xf2a   :  { %v883_v63 = vmul.f32 %v1147_v0, %v1652_v61 }
 0xf2b   :  { %v912_v39 = vsel %vm256_vm2, %v890_v38, 0.0 }
 0xf2c   :  { %v891_v3 = vsel %vm256_vm2, %v883_v63, 0.0 }
 0xf2d   :  { %892 = vadd.xlane.f32.xlu1 %v891_v3 }
 0xf31   :  { %913 = vadd.xlane.f32.xlu1 %v912_v39 }
 0xf40   :  { %v902_v8 = vpop.xlane.xlu1 %901 }
 0xf44   :  { %v908_v35 = vpop.xlane.xlu1 %907 }
 0xf5a   :  { %v896_v4 = vpop.xlane.xlu0 %895 }
 0xf5e   :  { %v899_v34 = vpop.xlane.xlu0 %898 }
 0xf5f   :  { %v916_v19 = vmax.f32 %v899_v34, %v902_v8 }
 0xf62   :  { %v905_v11 = vpop.xlane.xlu0 %904 }
 0xf63   :  { %v917_v51 = vmax.f32 %v905_v11, %v908_v35 }
 0xf66   :  { %v911_v16 = vpop.xlane.xlu0 %910 }
 0xfba   :  { %v893_v14 = vpop.xlane.xlu1 %892 }
 0xfbb   :  { %v915_v15 = vmax.f32 %v893_v14, %v896_v4 }
 0xfbd   :  { %v919_v18 = vmax.f32 %v915_v15, %v916_v19 }
 0xfbe   :  { %v914_v17 = vpop.xlane.xlu1 %913 }
 0xfbf   :  { %v918_v7 = vmax.f32 %v911_v16, %v914_v17 }
 0xfc1   :  { %v920_v21 = vmax.f32 %v917_v51, %v918_v7 }
 0xfc3   :  { %v921_v24 = vmax.f32 %v919_v18, %v920_v21 }
 0xfc5   :  { %v929_v2 = vsub.f32 %v914_v17, %v921_v24  ;;  %v922_v25 = vsub.f32 %v893_v14, %v921_v24  ;;  %v923_v1 = vsub.f32 %v896_v4, %v921_v24  ;;  %v924_v26 = vsub.f32 %v899_v34, %v921_v24 }
 0xfc6   :  { %v925_v5 = vsub.f32 %v902_v8, %v921_v24  ;;  %v926_v28 = vsub.f32 %v905_v11, %v921_v24  ;;  %v927_v10 = vsub.f32 %v908_v35, %v921_v24  ;;  %v928_v20 = vsub.f32 %v911_v16, %v921_v24 }
 0xfc7   :  { %v944_v6 = vmul.f32 1.442695, %v929_v2  ;;  %v930_v29 = vmul.f32 1.442695, %v922_v25  ;;  %v932_v9 = vmul.f32 1.442695, %v923_v1 }
 0xfc8   :  { %v934_v22 = vmul.f32 1.442695, %v924_v26  ;;  %v936_v40 = vmul.f32 1.442695, %v925_v5  ;;  %v938_v32 = vmul.f32 1.442695, %v926_v28 }
 0xfc9   :  { %1252 = vpow2.f32 %v944_v6  ;;  %v940_v41 = vmul.f32 1.442695, %v927_v10  ;;  %v942_v12 = vmul.f32 1.442695, %v928_v20 }
 0xfca   :  { %1254 = vpow2.f32 %v930_v29 }
 0xfcb   :  { %1256 = vpow2.f32 %v932_v9 }
 0xfcc   :  { %1258 = vpow2.f32 %v934_v22 }
 0xfcd   :  { %1260 = vpow2.f32 %v936_v40 }
 0xfce   :  { %1262 = vpow2.f32 %v938_v32 }
 0xfcf   :  { %1264 = vpow2.f32 %v940_v41 }
 0xfd0   :  { %1266 = vpow2.f32 %v942_v12 }
 0xfd3   :  { %v1253_v13 = vpop.eup %1252 }
 0xfd4   :  { %v1255_v30 = vpop.eup %1254 }
 0xfd5   :  { %v1257_v23 = vpop.eup %1256  ;;  %955 = vperm.xlu1 %1177, %v1255_v30  }
 0xfd6   :  { %v1259_v27 = vpop.eup %1258  ;;  %v946_v42 = vadd.f32 %v1257_v23, %v1255_v30 }
 0xfd7   :  { %v1261_v48 = vpop.eup %1260 }
 0xfd8   :  { %v1263_v36 = vpop.eup %1262  ;;  %v947_v0 = vadd.f32 %v1261_v48, %v1259_v27 }
 0xfd9   :  { %v1265_v43 = vpop.eup %1264  ;;  %961 = vperm.xlu1 %1177, %v1257_v23  }
 0xfda   :  { %v1267_v31 = vpop.eup %1266  ;;  %v948_v44 = vadd.f32 %v1265_v43, %v1263_v36  ;;  %v950_v47 = vadd.f32 %v947_v0, %v946_v42 }
 0xfdb   :  { %v949_v45 = vadd.f32 %v1267_v31, %v1253_v13 }
 0xfdd   :  { %v951_v50 = vadd.f32 %v949_v45, %v948_v44  ;;  %967 = vperm.xlu1 %1177, %v1259_v27  }
 0xfdf   :  { %v952_v52 = vadd.f32 %v951_v50, %v950_v47 }
 0xfe1   :  { %1010 = vperm.xlu0 %1176, %v952_v52   ;;  %973 = vperm.xlu1 %1177, %v1261_v48  }
 0xfe5   :  { %979 = vperm.xlu1 %1177, %v1263_v36  }
 0xfe9   :  { %985 = vperm.xlu1 %1177, %v1265_v43  }
 0xfed   :  { %991 = vperm.xlu1 %1177, %v1267_v31  }
 0xff1   :  { %997 = vperm.xlu1 %1177, %v1253_v13  }
0x1054   :  { %v956_v60 = vpop.permute.xlu1 %955 }
0x1055   :  { %v958_v16 = vmul.f32 %v956_v60, %v1652_v61 }
0x1058   :  { %v962_v63 = vpop.permute.xlu1 %961 }
0x1059   :  { %v964_v11 = vmul.f32 %v962_v63, %v1634_v46 }
0x105b   :  { %v1001_v21 = vadd.f32 %v964_v11, %v958_v16 }
0x105c   :  { %v968_v3 = vpop.permute.xlu1 %967 }
0x105d   :  { %v970_v14 = vmul.f32 %v968_v3, %v1637_v49 }
0x1060   :  { %v974_v38 = vpop.permute.xlu1 %973  ;;  %v1011_v8 = vpop.permute.xlu0 %1010 }
0x1061   :  { %v976_v35 = vmul.f32 %v974_v38, %v1623_v37  ;;  %1268 = vrcp.f32 %v1011_v8 }
0x1063   :  { %v1002_v19 = vadd.f32 %v976_v35, %v970_v14 }
0x1064   :  { %v980_v39 = vpop.permute.xlu1 %979 }
0x1065   :  { %v982_v51 = vmul.f32 %v980_v39, %v1641_v53  ;;  %v1005_v2 = vadd.f32 %v1002_v19, %v1001_v21 }
0x1068   :  { %v986_v4 = vpop.permute.xlu1 %985 }
0x1069   :  { %v988_v15 = vmul.f32 %v986_v4, %v1630_v33  ;;  %v1148_v33 = vld [vmem:[%s1700_s6] ss:$0 sm:$0xff] }
0x106b   :  { %v1003_v24 = vadd.f32 %v988_v15, %v982_v51  ;;  %v1269_v1 = vpop.eup %1268 }
0x106c   :  { %v992_v34 = vpop.permute.xlu1 %991 }
0x106d   :  { %v994_v7 = vmul.f32 %v992_v34, %v1645_v56 }
0x1070   :  { %v998_v17 = vpop.permute.xlu1 %997 }
0x1071   :  { %v1000_v18 = vmul.f32 %v998_v17, %v1654_v62 }
0x1073   :  { %v1004_v37 = vadd.f32 %v1000_v18, %v994_v7 }
0x1075   :  { %v1006_v25 = vadd.f32 %v1004_v37, %v1003_v24 }
0x1077   :  { %v1007_v46 = vadd.f32 %v1006_v25, %v1005_v2 }
0x1079   :  { %v1014_v49 = vmul.f32 %v1269_v1, %v1007_v46 }
0x107b   :  { %v1015_v26 = vpack.c.bf16 %v1014_v49, %v1014_v49 }
0x107d   :  { %1168 = vmatmul.mubr.msk.bf16.vlgmr.msra.gmra.mrb[28].mxu0 %vm256_vm2, %v1015_v26 }
0x1150   :  { %v1092_v53 = vpop.f32.mrb[28].mxu0 }
0x1151   :  { %v1093_v56 = vadd.f32 %v1148_v33, %v1092_v53  ;;  %v1169_v61 = vpop.f32.mrb[29].mxu0 }
0x1152   :  { %v1095_v62 = vpop.f32.mrb[30].mxu0 }
0x1153   :  { %v1170_v5 = vpop.f32.mrb[31].mxu0  ;;  %v1100_v28 = vsel %vm1098_vm5, %v1093_v56, -inf  ;;  %1099 = vst.msk [vmem:[%s1701_s7] sm:$0xff] %vm1098_vm5, %v1093_v56 }
0x1154   :  { %1101 = vmax.xlane.f32.xlu0 %v1100_v28 }
0x11e1   :  { %v1102_v6 = vpop.xlane.xlu0 %1101 }
0x11e2   :  { %v1103_v29 = vsub.f32 %v1093_v56, %v1102_v6 }
0x11e4   :  { %v1104_v9 = vmul.f32 1.442695, %v1103_v29 }
0x11e6   :  { %1270 = vpow2.f32 %v1104_v9 }
0x11f0   :  { %v1271_v10 = vpop.eup %1270 }
0x11f1   :  { %v1106_v20 = vsel %vm1098_vm5, %v1271_v10, 0.0 }
0x11f2   :  { %1107 = vadd.xlane.f32.xlu1 %v1106_v20 }
0x127f   :  { %v1108_v22 = vpop.xlane.xlu1 %1107 }
0x1280   :  { %1272 = vrcp.f32 %v1108_v22 }
0x128a   :  { %v1273_v40 = vpop.eup %1272 }
0x128b   :  { %v1110_v32 = vmul.f32 %v1273_v40, %v1271_v10 }
0x128d   :  { %1111 = vst.msk [vmem:[%s1702_s8] sm:$0xff] %vm1098_vm5, %v1110_v32 }

</bundles_post_ra>
